<compile_context>
chip_gen: v5e
topology: v5e:2x2
jax: 0.10.0
libtpu: 0.0.40
codegen_flags: <defaults>
</compile_context>

<pallas_src>
import jax
import jax.numpy as jnp
from jax.experimental import pallas as pl
from jax.experimental.pallas import tpu as pltpu

HIDDEN = 1000        # encoder output dim (nn.Linear(1000, 2) input)
NUM_CLASSES = 2
H_PAD = 1024         # HIDDEN padded to a multiple of 128 lanes
N_PAD = 128          # head output padded to one full lane group


def _round_up(x, m):
    return (x + m - 1) // m * m


def _classifier_kernel(x_ref, we_ref, be_ref, wl_ref, bl_ref, o_ref, acc_ref):
    # grid = (M tiles, K tiles); K is the contraction over d_in.
    k = pl.program_id(1)

    @pl.when(k == 0)
    def _():
        acc_ref[...] = jnp.zeros_like(acc_ref)

    # Encoder partial matmul: (tm, tk) bf16 @ (tk, H_PAD) bf16 -> f32 accum.
    # TODO(synk): the real encoder is an arbitrary nn.Module passed into
    # Classifier.__init__; a linear encoder stands in for it here.
    acc_ref[...] += jnp.dot(x_ref[...], we_ref[...],
                            preferred_element_type=jnp.float32)

    @pl.when(k == pl.num_programs(1) - 1)
    def _():
        feat = acc_ref[...] + be_ref[...]                       # (tm, H_PAD) f32
        # Classifier head: (tm, H_PAD) @ (H_PAD, N_PAD) + bias, lane-dense store.
        o_ref[...] = jnp.dot(feat.astype(jnp.bfloat16), wl_ref[...],
                             preferred_element_type=jnp.float32) + bl_ref[...]


def classifier_forward(x_nchw, w_enc, b_enc, w_head, b_head):
    """x_nchw: (B, C, H, W) float32.  Returns logits (B, 2) float32."""
    B = x_nchw.shape[0]
    d_in = x_nchw.shape[1] * x_nchw.shape[2] * x_nchw.shape[3]
    x2d = x_nchw.reshape(B, d_in)          # NCHW flatten, same as torch.flatten

    # ---- tiling ----------------------------------------------------------
    B8 = _round_up(B, 8)                   # f32 sublane multiple
    tm = min(128, B8)                      # M tile
    B_pad = _round_up(B, tm)

    d128 = _round_up(d_in, 128)
    tk = min(512, d128)                    # K tile: ~1 MiB bf16 weight block
    d_pad = _round_up(d128, tk)

    m_tiles = B_pad // tm
    k_tiles = d_pad // tk

    # ---- pad & cast operands once in the wrapper --------------------------
    x_p = jnp.zeros((B_pad, d_pad), jnp.bfloat16).at[:B, :d_in].set(
        x2d.astype(jnp.bfloat16))
    we_p = jnp.zeros((d_pad, H_PAD), jnp.bfloat16).at[:d_in, :HIDDEN].set(
        w_enc.astype(jnp.bfloat16))
    be_p = jnp.zeros((1, H_PAD), jnp.float32).at[:, :HIDDEN].set(b_enc)
    wl_p = jnp.zeros((H_PAD, N_PAD), jnp.bfloat16).at[:HIDDEN, :NUM_CLASSES].set(
        w_head.astype(jnp.bfloat16))
    bl_p = jnp.zeros((1, N_PAD), jnp.float32).at[:, :NUM_CLASSES].set(b_head)

    cost = pl.CostEstimate(
        flops=2 * B_pad * d_pad * H_PAD + 2 * B_pad * H_PAD * N_PAD,
        transcendentals=0,
        bytes_accessed=(x_p.size * 2 + we_p.size * 2 + be_p.size * 4
                        + wl_p.size * 2 + bl_p.size * 4 + B_pad * N_PAD * 4),
    )

    out = pl.pallas_call(
        _classifier_kernel,
        out_shape=jax.ShapeDtypeStruct((B_pad, N_PAD), jnp.float32),
        grid_spec=pltpu.PrefetchScalarGridSpec(
            num_scalar_prefetch=0,
            grid=(m_tiles, k_tiles),
            in_specs=[
                pl.BlockSpec((tm, tk), lambda i, k: (i, k)),        # x
                pl.BlockSpec((tk, H_PAD), lambda i, k: (k, 0)),     # encoder W
                pl.BlockSpec((1, H_PAD), lambda i, k: (0, 0)),      # encoder b
                pl.BlockSpec((H_PAD, N_PAD), lambda i, k: (0, 0)),  # head W
                pl.BlockSpec((1, N_PAD), lambda i, k: (0, 0)),      # head b
            ],
            out_specs=pl.BlockSpec((tm, N_PAD), lambda i, k: (i, 0)),
            scratch_shapes=[pltpu.VMEM((tm, H_PAD), jnp.float32)],
        ),
        compiler_params=pltpu.CompilerParams(
            dimension_semantics=("parallel", "arbitrary")),
        cost_estimate=cost,
    )(x_p, we_p, be_p, wl_p, bl_p)

    return out[:B, :NUM_CLASSES]


def init_params(key, d_in):
    """Deterministic synthetic params (PyTorch-style uniform fan-in init)."""
    k1, k2, k3, k4 = jax.random.split(key, 4)
    lim_e = 1.0 / jnp.sqrt(d_in)
    lim_l = 1.0 / jnp.sqrt(HIDDEN)
    w_enc = jax.random.uniform(k1, (d_in, HIDDEN), jnp.float32, -lim_e, lim_e)
    b_enc = jax.random.uniform(k2, (1, HIDDEN), jnp.float32, -lim_e, lim_e)
    w_head = jax.random.uniform(k3, (HIDDEN, NUM_CLASSES), jnp.float32, -lim_l, lim_l)
    b_head = jax.random.uniform(k4, (1, NUM_CLASSES), jnp.float32, -lim_l, lim_l)
    return w_enc, b_enc, w_head, b_head


if __name__ == "__main__":
    key = jax.random.PRNGKey(0)
    kx, kp = jax.random.split(key)

    B, C, H, W = 2, 4, 16, 16
    x = jax.random.normal(kx, (B, C, H, W), jnp.float32)

    w_enc, b_enc, w_head, b_head = init_params(kp, C * H * W)

    out = classifier_forward(x, w_enc, b_enc, w_head, b_head)
    out = jax.block_until_ready(out)

    # Pure-JAX reference with the same numerics (bf16 operands, f32 accumulate)
    x2d = x.reshape(B, -1)
    feat_ref = jnp.dot(x2d.astype(jnp.bfloat16), w_enc.astype(jnp.bfloat16),
                       preferred_element_type=jnp.float32) + b_enc
    ref = jnp.dot(feat_ref.astype(jnp.bfloat16), w_head.astype(jnp.bfloat16),
                  preferred_element_type=jnp.float32) + b_head

    assert out.shape == (B, NUM_CLASSES)
    assert jnp.allclose(out, ref, atol=1e-3, rtol=1e-3)

    print("KERNEL_OK")
</pallas_src>

<mosaic_0001>
module attributes {stable_mosaic.version = 11 : i64} {
  func.func @_classifier_kernel(%arg0: i32, %arg1: i32, %arg2: memref<8x512xbf16, #tpu.memory_space<vmem>>, %arg3: memref<512x1024xbf16, #tpu.memory_space<vmem>>, %arg4: memref<1x1024xf32, #tpu.memory_space<vmem>>, %arg5: memref<1024x128xbf16, #tpu.memory_space<vmem>>, %arg6: memref<1x128xf32, #tpu.memory_space<vmem>>, %arg7: memref<8x128xf32, #tpu.memory_space<vmem>>, %arg8: memref<8x1024xf32, #tpu.memory_space<vmem>>) attributes {dimension_semantics = [#tpu.dimension_semantics<parallel>, #tpu.dimension_semantics<arbitrary>], iteration_bounds = array<i64: 1, 2>, scalar_prefetch = 0 : i64, scratch_operands = 1 : i64, tpu.core_type = #tpu.core_type<tc>, window_params = [{transform_indices = @transform_0, window_bounds = array<i64: 8, 512>}, {transform_indices = @transform_1, window_bounds = array<i64: 512, 1024>}, {pipeline_mode = #tpu.pipeline_mode<synchronous>, transform_indices = @transform_2, window_bounds = array<i64: 1, 1024>}, {pipeline_mode = #tpu.pipeline_mode<synchronous>, transform_indices = @transform_3, window_bounds = array<i64: 1024, 128>}, {pipeline_mode = #tpu.pipeline_mode<synchronous>, transform_indices = @transform_4, window_bounds = array<i64: 1, 128>}, {transform_indices = @transform_5, window_bounds = array<i64: 8, 128>}]} {
    %c0_i32 = arith.constant 0 : i32
    %0 = arith.cmpi eq, %arg1, %c0_i32 : i32
    %1 = arith.extui %0 : i1 to i32
    %c0_i32_0 = arith.constant 0 : i32
    %2 = arith.cmpi ne, %1, %c0_i32_0 : i32
    scf.if %2 {
      %cst_9 = arith.constant 0.000000e+00 : f32
      %12 = vector.broadcast %cst_9 : f32 to vector<8x1024xf32>
      %c0_10 = arith.constant 0 : index
      %c0_11 = arith.constant 0 : index
      %13 = vector.load %arg8[%c0_10, %c0_11] : memref<8x1024xf32, #tpu.memory_space<vmem>>, vector<8x1024xf32>
      tpu.vector_store %arg8[%c0_10, %c0_11], %12 {strides = array<i32>} : memref<8x1024xf32, #tpu.memory_space<vmem>>, vector<8x1024xf32>,
    } else {
    }
    %c0 = arith.constant 0 : index
    %c0_1 = arith.constant 0 : index
    %3 = vector.load %arg8[%c0, %c0_1] : memref<8x1024xf32, #tpu.memory_space<vmem>>, vector<8x1024xf32>
    %c0_2 = arith.constant 0 : index
    %c0_3 = arith.constant 0 : index
    %4 = vector.load %arg2[%c0_2, %c0_3] : memref<8x512xbf16, #tpu.memory_space<vmem>>, vector<8x512xbf16>
    %c0_4 = arith.constant 0 : index
    %c0_5 = arith.constant 0 : index
    %5 = vector.load %arg3[%c0_4, %c0_5] : memref<512x1024xbf16, #tpu.memory_space<vmem>>, vector<512x1024xbf16>
    %cst = arith.constant dense<0.000000e+00> : vector<8x1024xf32>
    %6 = tpu.matmul %4, %5, %cst {dimension_numbers = #tpu.dot_dimension_numbers<[1], [0], [0], [1], [0, 0, 1, 1], [], []>} : vector<8x512xbf16>, vector<512x1024xbf16>, vector<8x1024xf32> -> vector<8x1024xf32>
    %7 = arith.addf %3, %6 : vector<8x1024xf32>
    %c0_6 = arith.constant 0 : index
    %c0_7 = arith.constant 0 : index
    %8 = vector.load %arg8[%c0_6, %c0_7] : memref<8x1024xf32, #tpu.memory_space<vmem>>, vector<8x1024xf32>
    tpu.vector_store %arg8[%c0_6, %c0_7], %7 {strides = array<i32>} : memref<8x1024xf32, #tpu.memory_space<vmem>>, vector<8x1024xf32>,
    %c1_i32 = arith.constant 1 : i32
    %9 = arith.cmpi eq, %arg1, %c1_i32 : i32
    %10 = arith.extui %9 : i1 to i32
    %c0_i32_8 = arith.constant 0 : i32
    %11 = arith.cmpi ne, %10, %c0_i32_8 : i32
    scf.if %11 {
      %c0_9 = arith.constant 0 : index
      %c0_10 = arith.constant 0 : index
      %12 = vector.load %arg8[%c0_9, %c0_10] : memref<8x1024xf32, #tpu.memory_space<vmem>>, vector<8x1024xf32>
      %c0_11 = arith.constant 0 : index
      %c0_12 = arith.constant 0 : index
      %13 = vector.load %arg4[%c0_11, %c0_12] : memref<1x1024xf32, #tpu.memory_space<vmem>>, vector<1x1024xf32>
      %14 = vector.broadcast %13 : vector<1x1024xf32> to vector<8x1024xf32>
      %15 = arith.addf %12, %14 : vector<8x1024xf32>
      %16 = arith.truncf %15 : vector<8x1024xf32> to vector<8x1024xbf16>
      %c0_13 = arith.constant 0 : index
      %c0_14 = arith.constant 0 : index
      %17 = vector.load %arg5[%c0_13, %c0_14] : memref<1024x128xbf16, #tpu.memory_space<vmem>>, vector<1024x128xbf16>
      %cst_15 = arith.constant dense<0.000000e+00> : vector<8x128xf32>
      %18 = tpu.matmul %16, %17, %cst_15 {dimension_numbers = #tpu.dot_dimension_numbers<[1], [0], [0], [1], [0, 0, 1, 1], [], []>} : vector<8x1024xbf16>, vector<1024x128xbf16>, vector<8x128xf32> -> vector<8x128xf32>
      %c0_16 = arith.constant 0 : index
      %c0_17 = arith.constant 0 : index
      %19 = vector.load %arg6[%c0_16, %c0_17] : memref<1x128xf32, #tpu.memory_space<vmem>>, vector<1x128xf32>
      %20 = vector.broadcast %19 : vector<1x128xf32> to vector<8x128xf32>
      %21 = arith.addf %18, %20 : vector<8x128xf32>
      %c0_18 = arith.constant 0 : index
      %c0_19 = arith.constant 0 : index
      %22 = vector.load %arg7[%c0_18, %c0_19] : memref<8x128xf32, #tpu.memory_space<vmem>>, vector<8x128xf32>
      tpu.vector_store %arg7[%c0_18, %c0_19], %21 {strides = array<i32>} : memref<8x128xf32, #tpu.memory_space<vmem>>, vector<8x128xf32>,
    } else {
    }
    return
  }
  func.func @transform_0(%arg0: i32, %arg1: i32) -> (i32, i32) {
    %c0_i32 = arith.constant 0 : i32
    return %arg0, %arg1 : i32, i32
  }
  func.func @transform_1(%arg0: i32, %arg1: i32) -> (i32, i32) {
    %c0_i32 = arith.constant 0 : i32
    %c0_i32_0 = arith.constant 0 : i32
    return %arg1, %c0_i32 : i32, i32
  }
  func.func @transform_2(%arg0: i32, %arg1: i32) -> (i32, i32) {
    %c0_i32 = arith.constant 0 : i32
    %c0_i32_0 = arith.constant 0 : i32
    %c0_i32_1 = arith.constant 0 : i32
    return %c0_i32, %c0_i32_0 : i32, i32
  }
  func.func @transform_3(%arg0: i32, %arg1: i32) -> (i32, i32) {
    %c0_i32 = arith.constant 0 : i32
    %c0_i32_0 = arith.constant 0 : i32
    %c0_i32_1 = arith.constant 0 : i32
    return %c0_i32, %c0_i32_0 : i32, i32
  }
  func.func @transform_4(%arg0: i32, %arg1: i32) -> (i32, i32) {
    %c0_i32 = arith.constant 0 : i32
    %c0_i32_0 = arith.constant 0 : i32
    %c0_i32_1 = arith.constant 0 : i32
    return %c0_i32, %c0_i32_0 : i32, i32
  }
  func.func @transform_5(%arg0: i32, %arg1: i32) -> (i32, i32) {
    %c0_i32 = arith.constant 0 : i32
    %c0_i32_0 = arith.constant 0 : i32
    return %arg0, %c0_i32 : i32, i32
  }
}

</mosaic_0001>

<bundles_post_ra>
// kernel: tpu_custom_call.1
= control target key start
LH: loop header
LB: loop body
LE: loop exit
PB: predicated region body
PF: predicated region fallthrough
CT: control target
= control target key end

     0   :  { %s5869_s0 = inlined_call_operand.hbm [shape: bf16[8,1024], index: 0, kind: input, shape index: {}]   ;;  %s5870_s1 = inlined_call_operand.hbm [shape: bf16[1024,1024], index: 1, kind: input, shape index: {}]   ;;  %s5871_s2 = inlined_call_operand.hbm [shape: f32[1,1024], index: 2, kind: input, shape index: {}]   ;;  %s5872_s3 = inlined_call_operand.hbm [shape: bf16[1024,128], index: 3, kind: input, shape index: {}]   ;;  %s5873_s4 = inlined_call_operand.hbm [shape: f32[1,128], index: 4, kind: input, shape index: {}]   ;;  %s5874_s5 = inlined_call_operand.hbm [shape: f32[8,128], index: 5, kind: output, shape index: {}]  }
   0x1   :  { %5875 = sst [smem:[#allocation18_spill]] %s5869_s0 }
   0x2   :  { %5876 = sst [smem:[#allocation19_spill]] %s5871_s2 }
   0x3   :  { %10 = vsyncpa [#allocation4], 0 }
   0x4   :  { %12 = vsyncpa [#allocation4 + $0x1], 0 }
   0x5   :  { %13 = vsyncpa [#allocation7], 0 }
   0x6   :  { %15 = vsyncpa [#allocation7 + $0x1], 0 }
   0x7   :  { %16 = vsyncpa [#allocation10], 0 }
   0x8   :  { %17 = vsyncpa [#allocation5], 0  ;;  %s5156_s18 = smov 0   ;;  %s5158_s19 = smov 0  }
   0x9   :  { %s5160_s20 = smov 0   ;;  %s5162_s21 = smov 0  }
   0xa   :  { %s5164_s22 = smov 0   ;;  %s5166_s23 = smov 0  }
   0xb LB: > { %s5185_s24 = sadd.s32 4294967295, %s5115_s23   ;;  %p57_p0 = scmp.ne.s32.totalorder %s5099_s19, %s5095_s18  ;;  %s5115_s23 = sphi %s5166_s23, %s23_s23   ;;  %s5111_s22 = sphi %s5164_s22, %s5887_s22   ;;  %s5107_s21 = sphi %s5162_s21, %s5886_s21   ;;  %s5103_s20 = sphi %s5160_s20, %s5885_s20   ;;  %s5099_s19 = sphi %s5158_s19, %s5884_s19   ;;  %s5095_s18 = sphi %s5156_s18, %s5883_s18  }
   0xc   : > { %p58_p1 = scmp.eq.s32.totalorder %s5185_s24, 0  ;;  %p3140_p2 = scmp.ge.s32.totalorder %s5115_s23, 1 }
   0xd   : > { %p183_p3 = scmp.lt.s32.totalorder %s5115_s23, 3  ;;  %s5878_s2 = sld [smem:[#allocation19_spill]] }
   0xe   : > { %p5193_p4 = por %p58_p1, %p57_p0  ;;  %s5117_s30 = smov [#allocation8]  }
   0xf   : > { %p5200_p5 = pnand %p3140_p2, %p183_p3  ;;  %s197_s6 = sshll.u32 %s5117_s30, 4  ;;  %s198_s6 = int_to_ptr.vmem [resolvable:$true] %s197_s6 }
  0x10   : > { %s206_s9 = sshll.u32 %s5872_s3, 4  ;;  %s5118_s11 = smov [#allocation9]   ;;  %s207_s9 = int_to_ptr.hbm [resolvable:$true] %s206_s9 }
  0x11   : > { %p4787_p6 = pneg %p5200_p5  ;;  %s208_s12 = sshll.u32 %s5118_s11, 4  ;;  %s209_s12 = int_to_ptr.vmem [resolvable:$true] %s208_s12 }
  0x12   : > { %s5119_s13 = smov 64   ;;  %s5120_s14 = smov 4  }
  0x13   : > { %s195_s28 = sshll.u32 %s5878_s2, 4  ;;  %p5211_p7 = pnand %p4787_p6, %p58_p1  ;;  %s196_s28 = int_to_ptr.hbm [resolvable:$true] %s195_s28 }
  0x14   : > { %s221_s17 = sshll.u32 %s5873_s4, 4  ;;  %s5121_s18 = smov [#allocation11]   ;;  %s222_s17 = int_to_ptr.hbm [resolvable:$true] %s221_s17 }
  0x15   : > { %4790 = dma.hbm_to_vmem [thread:$0]  (!%p5211_p7), %s196_s28, 128, %s198_s6, [#allocation7]  }
  0x16   : > { %4793 = dma.hbm_to_vmem [thread:$0]  (!%p5211_p7), %s207_s9, 8192, %s209_s12, [#allocation10], %s5119_s13, %s5119_s13, %s5120_s14  }
  0x17   : > { %s223_s26 = sshll.u32 %s5121_s18, 4  ;;  %s44_s27 = sadd.s32 1, %s5103_s20  ;;  %s224_s26 = int_to_ptr.vmem [resolvable:$true] %s223_s26 }
  0x18   : > { %4796 = dma.hbm_to_vmem [thread:$0]  (!%p5211_p7), %s222_s17, 16, %s224_s26, [#allocation10]  }
  0x19   : > { %s32_s28 = sadd.s32 1, %s5111_s22  ;;  %p51_p8 = scmp.ne.s32.totalorder %s5103_s20, %s5099_s19 }
  0x1a   : > { %p33_p9 = scmp.ge.s32.totalorder %s32_s28, 2  ;;  %p52_p10 = scmp.eq.s32.totalorder %s5115_s23, 0 }
  0x1b   : > { %p4807_p11 = scmp.lt.s32.totalorder %s5115_s23, 2  ;;  %s234_s30 = sand.u32 1, %s5103_s20  }
  0x1c   : > { %s5889_s28 = smov (%p33_p9, %s32_s28), 0  ;;  %p53_p12 = por %p52_p10, %p51_p8 }
  0x1d   : > { %s40_s6 = ssub.s32 %s5111_s22, %s5889_s28  ;;  %s3145_s7 = sshll.u32 %s234_s30, 4 }
  0x1e   : > { %p42_p13 = scmp.eq.s32.totalorder %s40_s6, 0  ;;  %s4444_s8 = sshll.u32 %s5111_s22, 4 }
  0x1f   : > { %s238_s9 = scalar_lea.vmem [#allocation3], %s3145_s7  ;;  %s5881_s0 = sld [smem:[#allocation18_spill]] }
  0x20   : > { %s249_s10 = sshll.u32 %s238_s9, 4  ;;  %p5244_p0 = pnand %p4807_p11, %p53_p12  ;;  %s250_s10 = int_to_ptr.vmem [resolvable:$true] %s249_s10 }
  0x21   : > { %s5237_s11 = scalar_select %p42_p13, %s5103_s20, %s44_s27  }
  0x22   : > { %s3148_s17 = sshll.u32 %s234_s30, 11  ;;  %s235_s18 = scalar_lea.sflag [#allocation4], %s234_s30 }
  0x23   : > { %s4446_s26 = sshll.u32 %s5111_s22, 11  ;;  %s260_s27 = scalar_lea.vmem [#allocation6], %s3148_s17 }
  0x24   : > { %s269_s6 = sshll.u32 %s260_s27, 4  ;;  %s256_s7 = sand.u32 1, %s5115_s23   ;;  %s270_s6 = int_to_ptr.vmem [resolvable:$true] %s269_s6 }
  0x25   : > { %s245_s14 = scalar_lea.hbm %s5881_s0, %s4444_s8  ;;  %s266_s12 = scalar_lea.hbm %s5870_s1, %s4446_s26 }
  0x26   : > { %s247_s15 = sshll.u32 %s245_s14, 4  ;;  %s267_s13 = sshll.u32 %s266_s12, 4  ;;  %s248_s15 = int_to_ptr.hbm [resolvable:$true] %s247_s15  ;;  %s268_s13 = int_to_ptr.hbm [resolvable:$true] %s267_s13 }
  0x27   : > { %4800 = dma.hbm_to_vmem [thread:$0]  (!%p5244_p0), %s248_s15, 256, %s250_s10, %s235_s18  }
  0x28   : > { %s257_s14 = scalar_lea.sflag [#allocation7], %s256_s7  ;;  %s5122_s0 = smov 512  }
  0x29   : > { %s5123_s2 = smov 32   ;;  %281 = sbr.rel (%p5200_p5) target bundleno = 716 (0x2cc), region = 40 }
  0x2a   : > { %4803 = dma.hbm_to_vmem [thread:$0]  (!%p5244_p0), %s268_s13, 32768, %s270_s6, %s257_s14, %s5122_s0, %s5122_s0, %s5123_s2  }
  0x2b   : > { %s283_s30 = sand.u32 (!%p5200_p5), 1, %s5099_s19  }
  0x2c   : > { %s3153_s10 = sshll.u32 (!%p5200_p5), %s283_s30, 4  ;;  %s284_s15 = scalar_lea.sflag (!%p5200_p5), [#allocation4], %s283_s30 }
  0x2d   : > { %s5260_s17 = scalar_lea.vmem (!%p5200_p5), [#allocation3], %s3153_s10 }
  0x2e   : > { %5074 = dma.done.wait (%p5193_p4), %s284_s15, 256  }
  0x2f   : > { %5076 = vsyncadd (%p5193_p4), %s284_s15, 4294967040  ;;  %s293_s18 = sand.u32 1, %s5185_s24   ;;  %s3154_s16 = sshll.u32 %s283_s30, 11 }
  0x30   : > { %s294_s0 = scalar_lea.sflag [#allocation7], %s293_s18  ;;  %s5267_s2 = scalar_lea.vmem [#allocation6], %s3154_s16 }
  0x31   : > { %5078 = dma.done.wait (%p5193_p4), %s294_s0, 32768  }
  0x32   : > { %5080 = vsyncadd (%p5193_p4), %s294_s0, 4294934528 }
  0x33   : > { %5082 = dma.done.wait (%p58_p1), [#allocation7], 128  }
  0x34   : > { %5084 = vsyncadd (%p58_p1), [#allocation7], 4294967168 }
  0x35   : > { %5086 = dma.done.wait (%p58_p1), [#allocation10], 8208  }
  0x36   : > { %5088 = vsyncadd (%p58_p1), [#allocation10], 4294959088  ;;  %p3158_p2 = scmp.ne.s32.totalorder %s5107_s21, 0 }
  0x38   : > { %345 = sbr.rel (%p3158_p2) target bundleno = 70 (0x46), region = 64 }
  0x3d   : > { %v5124_v0 = vmov 0.0  }
  0x3e   : > { %346 = vst [vmem:[#allocation2 + $0x30] sm:$0xff] %v5124_v0 }
  0x3f   : > { %347 = vst [vmem:[#allocation2] sm:$0xff] %v5124_v0 }
  0x40   : > { %348 = vst [vmem:[#allocation2 + $0x18] sm:$0xff] %v5124_v0 }
  0x41   : > { %349 = vst [vmem:[#allocation2 + $0x10] sm:$0xff] %v5124_v0 }
  0x42   : > { %350 = vst [vmem:[#allocation2 + $0x8] sm:$0xff] %v5124_v0 }
  0x43   : > { %351 = vst [vmem:[#allocation2 + $0x20] sm:$0xff] %v5124_v0 }
  0x44   : > { %352 = vst [vmem:[#allocation2 + $0x28] sm:$0xff] %v5124_v0 }
  0x45   : > { %353 = vst [vmem:[#allocation2 + $0x38] sm:$0xff] %v5124_v0 }
  0x46 PF: > { %v3385_v1 = vld [vmem:[%s5267_s2 + $0x1c0] sm:$0xf]  ;;  %p4183_p1 = scmp.ne.s32.totalorder %s5107_s21, 1 }
  0x47   : > { %v4507_v2 = vld [vmem:[%s5267_s2 + $0x1dc] sm:$0xf0] }
  0x48   : > { %v3641_v3 = vld [vmem:[%s5267_s2 + $0x3c0] sm:$0xf]  ;;  %v3386_v4 = vor.u32 %v4507_v2, %v3385_v1 }
  0x49   : > { %v4571_v5 = vld [vmem:[%s5267_s2 + $0x3dc] sm:$0xf0] }
  0x4a   : > { %v3897_v6 = vld [vmem:[%s5267_s2 + $0x5c0] sm:$0xf]  ;;  %v3642_v8 = vor.u32 %v4571_v5, %v3641_v3  ;;  %1914 = vmatpush.bf16.msra.mxu0 %v3386_v4 }
  0x4b   : > { %v4635_v7 = vld [vmem:[%s5267_s2 + $0x5dc] sm:$0xf0] }
  0x4c   : > { %v3898_v9 = vor.u32 %v4635_v7, %v3897_v6  ;;  %v4153_v10 = vld [vmem:[%s5267_s2 + $0x7c0] sm:$0xf]  ;;  %1927 = vmatpush.bf16.msra.mxu1 %v3642_v8 }
  0x4d   : > { %v4699_v11 = vld [vmem:[%s5267_s2 + $0x7dc] sm:$0xf0] }
  0x4e   : > { %v3353_v12 = vld [vmem:[%s5267_s2 + $0x180] sm:$0xf]  ;;  %v4154_v13 = vor.u32 %v4699_v11, %v4153_v10  ;;  %1940 = vmatpush.bf16.msra.mxu2 %v3898_v9 }
  0x4f   : > { %v4499_v14 = vld [vmem:[%s5267_s2 + $0x19c] sm:$0xf0] }
  0x50   : > { %v3609_v15 = vld [vmem:[%s5267_s2 + $0x380] sm:$0xf]  ;;  %v3354_v17 = vor.u32 %v4499_v14, %v3353_v12  ;;  %1953 = vmatpush.bf16.msra.mxu3 %v4154_v13 }
  0x51   : > { %v4563_v16 = vld [vmem:[%s5267_s2 + $0x39c] sm:$0xf0] }
  0x52   : > { %v3610_v18 = vor.u32 %v4563_v16, %v3609_v15  ;;  %v3865_v19 = vld [vmem:[%s5267_s2 + $0x580] sm:$0xf]  ;;  %1915 = vmatpush.bf16.msra.mxu0 %v3354_v17 }
  0x53   : > { %v4627_v20 = vld [vmem:[%s5267_s2 + $0x59c] sm:$0xf0] }
  0x54   : > { %v4121_v21 = vld [vmem:[%s5267_s2 + $0x780] sm:$0xf]  ;;  %v3866_v22 = vor.u32 %v4627_v20, %v3865_v19  ;;  %1928 = vmatpush.bf16.msra.mxu1 %v3610_v18 }
  0x55   : > { %v4691_v23 = vld [vmem:[%s5267_s2 + $0x79c] sm:$0xf0] }
  0x56   : > { %v3321_v24 = vld [vmem:[%s5267_s2 + $0x140] sm:$0xf]  ;;  %v4122_v26 = vor.u32 %v4691_v23, %v4121_v21  ;;  %1941 = vmatpush.bf16.msra.mxu2 %v3866_v22 }
  0x57   : > { %v4491_v25 = vld [vmem:[%s5267_s2 + $0x15c] sm:$0xf0] }
  0x58   : > { %v3577_v27 = vld [vmem:[%s5267_s2 + $0x340] sm:$0xf]  ;;  %v3322_v30 = vor.u32 %v4491_v25, %v3321_v24  ;;  %1954 = vmatpush.bf16.msra.mxu3 %v4122_v26 }
  0x59   : > { %v4555_v28 = vld [vmem:[%s5267_s2 + $0x35c] sm:$0xf0] }
  0x5a   : > { %v3833_v29 = vld [vmem:[%s5267_s2 + $0x540] sm:$0xf]  ;;  %v3578_v34 = vor.u32 %v4555_v28, %v3577_v27  ;;  %1916 = vmatpush.bf16.msra.mxu0 %v3322_v30  ;;  %v3387_v30 = vld [vmem:[%s5267_s2 + $0x1e0] sm:$0xf0] }
  0x5b   : > { %v4619_v31 = vld [vmem:[%s5267_s2 + $0x55c] sm:$0xf0] }
  0x5c   : > { %v4089_v32 = vld [vmem:[%s5267_s2 + $0x740] sm:$0xf]  ;;  %v3834_v35 = vor.u32 %v4619_v31, %v3833_v29  ;;  %1929 = vmatpush.bf16.msra.mxu1 %v3578_v34  ;;  %v4503_v29 = vld [vmem:[%s5267_s2 + $0x1c4] sm:$0xf] }
  0x5d   : > { %v4683_v33 = vld [vmem:[%s5267_s2 + $0x75c] sm:$0xf0]  ;;  %v4567_v31 = vld [vmem:[%s5267_s2 + $0x3c4] sm:$0xf] }
  0x5e   : > { %v3289_v36 = vld [vmem:[%s5267_s2 + $0x100] sm:$0xf]  ;;  %v4090_v39 = vor.u32 %v4683_v33, %v4089_v32  ;;  %1942 = vmatpush.bf16.msra.mxu2 %v3834_v35  ;;  %v3643_v33 = vld [vmem:[%s5267_s2 + $0x3e0] sm:$0xf0] }
  0x5f   : > { %v4483_v37 = vld [vmem:[%s5267_s2 + $0x11c] sm:$0xf0]  ;;  %v4631_v34 = vld [vmem:[%s5267_s2 + $0x5c4] sm:$0xf] }
  0x60   : > { %v3545_v38 = vld [vmem:[%s5267_s2 + $0x300] sm:$0xf]  ;;  %v3290_v45 = vor.u32 %v4483_v37, %v3289_v36  ;;  %1955 = vmatpush.bf16.msra.mxu3 %v4090_v39  ;;  %v3899_v35 = vld [vmem:[%s5267_s2 + $0x5e0] sm:$0xf0] }
  0x61   : > { %v4547_v40 = vld [vmem:[%s5267_s2 + $0x31c] sm:$0xf0]  ;;  %v4155_v39 = vld [vmem:[%s5267_s2 + $0x7e0] sm:$0xf0] }
  0x62   : > { %v3801_v41 = vld [vmem:[%s5267_s2 + $0x500] sm:$0xf]  ;;  %v3546_v46 = vor.u32 %v4547_v40, %v3545_v38  ;;  %1917 = vmatpush.bf16.msra.mxu0 %v3290_v45  ;;  %v4695_v38 = vld [vmem:[%s5267_s2 + $0x7c4] sm:$0xf] }
  0x63   : > { %v4611_v42 = vld [vmem:[%s5267_s2 + $0x51c] sm:$0xf0]  ;;  %v3355_v45 = vld [vmem:[%s5267_s2 + $0x1a0] sm:$0xf0] }
  0x64   : > { %v4057_v43 = vld [vmem:[%s5267_s2 + $0x700] sm:$0xf]  ;;  %v3802_v47 = vor.u32 %v4611_v42, %v3801_v41  ;;  %1930 = vmatpush.bf16.msra.mxu1 %v3546_v46  ;;  %v3390_v41 = vor.u32 %v4503_v29, %v3387_v30  ;;  %v3646_v42 = vor.u32 %v4567_v31, %v3643_v33  ;;  %v4559_v46 = vld [vmem:[%s5267_s2 + $0x384] sm:$0xf] }
  0x65   : > { %v4675_v44 = vld [vmem:[%s5267_s2 + $0x71c] sm:$0xf0]  ;;  %v4599_v29 = vld [vmem:[%s5267_s2 + $0x4c4] sm:$0xf] }
  0x66   : > { %v3257_v48 = vld [vmem:[%s5267_s2 + $0xc0] sm:$0xf]  ;;  %v4058_v51 = vor.u32 %v4675_v44, %v4057_v43  ;;  %1943 = vmatpush.bf16.msra.mxu2 %v3802_v47  ;;  %v3902_v43 = vor.u32 %v4631_v34, %v3899_v35  ;;  %v4495_v44 = vld [vmem:[%s5267_s2 + $0x184] sm:$0xf]  ;;  %v4158_v47 = vor.u32 %v4695_v38, %v4155_v39 }
  0x67   : > { %v4475_v49 = vld [vmem:[%s5267_s2 + $0xdc] sm:$0xf0]  ;;  %v3771_v30 = vld [vmem:[%s5267_s2 + $0x4e0] sm:$0xf0] }
  0x68   : > { %v3513_v50 = vld [vmem:[%s5267_s2 + $0x2c0] sm:$0xf]  ;;  %v3258_v57 = vor.u32 %v4475_v49, %v3257_v48  ;;  %1956 = vmatpush.bf16.msra.mxu3 %v4058_v51  ;;  %v3611_v48 = vld [vmem:[%s5267_s2 + $0x3a0] sm:$0xf0] }
  0x69   : > { %v4539_v52 = vld [vmem:[%s5267_s2 + $0x2dc] sm:$0xf0]  ;;  %v4623_v49 = vld [vmem:[%s5267_s2 + $0x584] sm:$0xf] }
  0x6a   : > { %v3769_v53 = vld [vmem:[%s5267_s2 + $0x4c0] sm:$0xf]  ;;  %v3514_v58 = vor.u32 %v4539_v52, %v3513_v50  ;;  %1918 = vmatpush.bf16.msra.mxu0 %v3258_v57  ;;  %v3867_v50 = vld [vmem:[%s5267_s2 + $0x5a0] sm:$0xf0] }
  0x6b   : > { %v4603_v54 = vld [vmem:[%s5267_s2 + $0x4dc] sm:$0xf0]  ;;  %v4687_v51 = vld [vmem:[%s5267_s2 + $0x784] sm:$0xf] }
  0x6c   : > { %v4025_v55 = vld [vmem:[%s5267_s2 + $0x6c0] sm:$0xf]  ;;  %v3770_v59 = vor.u32 %v4603_v54, %v3769_v53  ;;  %1931 = vmatpush.bf16.msra.mxu1 %v3514_v58  ;;  %v4123_v52 = vld [vmem:[%s5267_s2 + $0x7a0] sm:$0xf0]  ;;  %v3358_v53 = vor.u32 %v4495_v44, %v3355_v45  ;;  %v3614_v54 = vor.u32 %v4559_v46, %v3611_v48 }
  0x6d   : > { %v4667_v56 = vld [vmem:[%s5267_s2 + $0x6dc] sm:$0xf0]  ;;  %v3323_v57 = vld [vmem:[%s5267_s2 + $0x160] sm:$0xf0] }
  0x6e   : > { %v3225_v60 = vld [vmem:[%s5267_s2 + $0x80] sm:$0xf]  ;;  %v4026_v63 = vor.u32 %v4667_v56, %v4025_v55  ;;  %1944 = vmatpush.bf16.msra.mxu2 %v3770_v59  ;;  %v3870_v55 = vor.u32 %v4623_v49, %v3867_v50  ;;  %v4487_v56 = vld [vmem:[%s5267_s2 + $0x144] sm:$0xf]  ;;  %v4126_v59 = vor.u32 %v4687_v51, %v4123_v52 }
  0x6f   : > { %v4467_v61 = vld [vmem:[%s5267_s2 + $0x9c] sm:$0xf0]  ;;  %v4551_v58 = vld [vmem:[%s5267_s2 + $0x344] sm:$0xf] }
  0x70   : > { %v3481_v62 = vld [vmem:[%s5267_s2 + $0x280] sm:$0xf]  ;;  %v3226_v5 = vor.u32 %v4467_v61, %v3225_v60  ;;  %1957 = vmatpush.bf16.msra.mxu3 %v4026_v63  ;;  %v3579_v60 = vld [vmem:[%s5267_s2 + $0x360] sm:$0xf0] }
  0x71   : > { %v4531_v0 = vld [vmem:[%s5267_s2 + $0x29c] sm:$0xf0]  ;;  %v4615_v61 = vld [vmem:[%s5267_s2 + $0x544] sm:$0xf] }
  0x72   : > { %v3737_v1 = vld [vmem:[%s5267_s2 + $0x480] sm:$0xf]  ;;  %v3482_v6 = vor.u32 %v4531_v0, %v3481_v62  ;;  %1919 = vmatpush.bf16.msra.mxu0 %v3226_v5  ;;  %v3835_v62 = vld [vmem:[%s5267_s2 + $0x560] sm:$0xf0] }
  0x73   : > { %v4595_v2 = vld [vmem:[%s5267_s2 + $0x49c] sm:$0xf0]  ;;  %v4679_v63 = vld [vmem:[%s5267_s2 + $0x744] sm:$0xf] }
  0x74   : > { %v3993_v3 = vld [vmem:[%s5267_s2 + $0x680] sm:$0xf]  ;;  %v3738_v7 = vor.u32 %v4595_v2, %v3737_v1  ;;  %1932 = vmatpush.bf16.msra.mxu1 %v3482_v6  ;;  %v4091_v0 = vld [vmem:[%s5267_s2 + $0x760] sm:$0xf0]  ;;  %v3326_v1 = vor.u32 %v4487_v56, %v3323_v57  ;;  %v363_v2 = vld [vmem:[%s5260_s17 + $0x8] sm:$0xff] }
  0x75   : > { %v4659_v4 = vld [vmem:[%s5267_s2 + $0x69c] sm:$0xf0]  ;;  %v4479_v5 = vld [vmem:[%s5267_s2 + $0x104] sm:$0xf] }
  0x76   : > { %v3193_v8 = vld [vmem:[%s5267_s2 + $0x40] sm:$0xf]  ;;  %v3994_v11 = vor.u32 %v4659_v4, %v3993_v3  ;;  %1945 = vmatpush.bf16.msra.mxu2 %v3738_v7  ;;  %v3582_v3 = vor.u32 %v4551_v58, %v3579_v60  ;;  %v3838_v4 = vor.u32 %v4615_v61, %v3835_v62  ;;  %v3291_v6 = vld [vmem:[%s5267_s2 + $0x120] sm:$0xf0] }
  0x77   : > { %v4459_v9 = vld [vmem:[%s5267_s2 + $0x5c] sm:$0xf0]  ;;  %v4543_v7 = vld [vmem:[%s5267_s2 + $0x304] sm:$0xf] }
  0x78   : > { %v3449_v10 = vld [vmem:[%s5267_s2 + $0x240] sm:$0xf]  ;;  %v3194_v17 = vor.u32 %v4459_v9, %v3193_v8  ;;  %1958 = vmatpush.bf16.msra.mxu3 %v3994_v11  ;;  %v624_v8 = vunpack.c.l.b16 %v363_v2  ;;  %v625_v9 = vunpack.c.h.b16 %v363_v2  ;;  %v3547_v11 = vld [vmem:[%s5267_s2 + $0x320] sm:$0xf0] }
  0x79   : > { %v4523_v12 = vld [vmem:[%s5267_s2 + $0x25c] sm:$0xf0]  ;;  %v4663_v33 = vld [vmem:[%s5267_s2 + $0x6c4] sm:$0xf] }
  0x7a   : > { %v3705_v13 = vld [vmem:[%s5267_s2 + $0x440] sm:$0xf]  ;;  %v3450_v20 = vor.u32 %v4523_v12, %v3449_v10  ;;  %1920 = vmatpush.bf16.msra.mxu0 %v3194_v17  ;;  %v4094_v10 = vor.u32 %v4679_v63, %v4091_v0  ;;  %v4607_v12 = vld [vmem:[%s5267_s2 + $0x504] sm:$0xf]  ;;  %v5381_v17 = vpack.c.b16 %v625_v9, %v625_v9  ;;  %v3649_v9 = vld [vmem:[%s5267_s2 + $0x3c8] sm:$0xf] }
  0x7b   : > { %v4587_v14 = vld [vmem:[%s5267_s2 + $0x45c] sm:$0xf0]  ;;  %v4027_v34 = vld [vmem:[%s5267_s2 + $0x6e0] sm:$0xf0] }
  0x7c   : > { %v3961_v15 = vld [vmem:[%s5267_s2 + $0x640] sm:$0xf]  ;;  %v3706_v21 = vor.u32 %v4587_v14, %v3705_v13  ;;  %1933 = vmatpush.bf16.msra.mxu1 %v3450_v20  ;;  %v3803_v13 = vld [vmem:[%s5267_s2 + $0x520] sm:$0xf0] }
  0x7d   : > { %v4651_v16 = vld [vmem:[%s5267_s2 + $0x65c] sm:$0xf0]  ;;  %v4671_v14 = vld [vmem:[%s5267_s2 + $0x704] sm:$0xf] }
  0x7e   : > { %v3161_v18 = vld [vmem:[%s5267_s2] sm:$0xf]  ;;  %v3962_v25 = vor.u32 %v4651_v16, %v3961_v15  ;;  %1946 = vmatpush.bf16.msra.mxu2 %v3706_v21  ;;  %v4059_v15 = vld [vmem:[%s5267_s2 + $0x720] sm:$0xf0]  ;;  %v5379_v16 = vpack.c.b16 %v624_v8, %v624_v8  ;;  %v4508_v8 = vld [vmem:[%s5267_s2 + $0x1e4] sm:$0xf0] }
  0x7f   : > { %v4451_v19 = vld [vmem:[%s5267_s2 + $0x1c] sm:$0xf0]  ;;  %v4463_v38 = vld [vmem:[%s5267_s2 + $0x84] sm:$0xf] }
  0x80   : > { %v3417_v22 = vld [vmem:[%s5267_s2 + $0x200] sm:$0xf]  ;;  %v3162_v32 = vor.u32 %v4451_v19, %v3161_v18  ;;  %1959 = vmatpush.bf16.msra.mxu3 %v3962_v25  ;;  %v3294_v19 = vor.u32 %v4479_v5, %v3291_v6  ;;  %v3259_v25 = vld [vmem:[%s5267_s2 + $0xe0] sm:$0xf0] }
  0x81   : > { %v4515_v23 = vld [vmem:[%s5267_s2 + $0x21c] sm:$0xf0]  ;;  %v3227_v39 = vld [vmem:[%s5267_s2 + $0xa0] sm:$0xf0] }
  0x82   : > { %v3673_v24 = vld [vmem:[%s5267_s2 + $0x400] sm:$0xf]  ;;  %v3418_v36 = vor.u32 %v4515_v23, %v3417_v22  ;;  %1921 = vmatpush.bf16.msra.mxu0 %v3162_v32  ;;  %v3550_v22 = vor.u32 %v4543_v7, %v3547_v11  ;;  %v3806_v23 = vor.u32 %v4607_v12, %v3803_v13  ;;  %v3739_v44 = vld [vmem:[%s5267_s2 + $0x4a0] sm:$0xf0]  ;;  %v3393_v7 = vld [vmem:[%s5267_s2 + $0x1c8] sm:$0xf] }
  0x83   : > { %v4579_v26 = vld [vmem:[%s5267_s2 + $0x41c] sm:$0xf0]  ;;  %v4655_v45 = vld [vmem:[%s5267_s2 + $0x684] sm:$0xf]  ;;  %v4572_v11 = vld [vmem:[%s5267_s2 + $0x3e4] sm:$0xf0] }
  0x84   : > { %v3929_v27 = vld [vmem:[%s5267_s2 + $0x600] sm:$0xf]  ;;  %v3674_v37 = vor.u32 %v4579_v26, %v3673_v24  ;;  %1934 = vmatpush.bf16.msra.mxu1 %v3418_v36  ;;  %v4471_v24 = vld [vmem:[%s5267_s2 + $0xc4] sm:$0xf]  ;;  %v3905_v12 = vld [vmem:[%s5267_s2 + $0x5c8] sm:$0xf] }
  0x85   : > { %v4643_v28 = vld [vmem:[%s5267_s2 + $0x61c] sm:$0xf0]  ;;  %v4535_v26 = vld [vmem:[%s5267_s2 + $0x2c4] sm:$0xf]  ;;  %v3262_v35 = vor.u32 %v4471_v24, %v3259_v25  ;;  %v4636_v13 = vld [vmem:[%s5267_s2 + $0x5e4] sm:$0xf0] }
  0x86   : > { %v3930_v40 = vor.u32 %v4643_v28, %v3929_v27  ;;  %1947 = vmatpush.bf16.msra.mxu2 %v3674_v37  ;;  %1966 = vmatpush.bf16.msrb.mxu0 %v3390_v41  ;;  %v362_v18 = vld [vmem:[%s5260_s17] sm:$0xff]  ;;  %v4062_v27 = vor.u32 %v4671_v14, %v4059_v15  ;;  %v3774_v37 = vor.u32 %v4599_v29, %v3771_v30  ;;  %v3361_v24 = vld [vmem:[%s5267_s2 + $0x188] sm:$0xf] }
  0x87   : > { %v622_v20 = vunpack.c.l.b16 %v362_v18  ;;  %v623_v21 = vunpack.c.h.b16 %v362_v18  ;;  %v3515_v28 = vld [vmem:[%s5267_s2 + $0x2e0] sm:$0xf0]  ;;  %v4030_v41 = vor.u32 %v4663_v33, %v4027_v34  ;;  %v4161_v18 = vld [vmem:[%s5267_s2 + $0x7c8] sm:$0xf] }
  0x88   : > { %1960 = vmatpush.bf16.msra.mxu3 %v3930_v40  ;;  %1979 = vmatpush.bf16.msrb.mxu1 %v3646_v42  ;;  %v3518_v36 = vor.u32 %v4535_v26, %v3515_v28  ;;  %v4527_v40 = vld [vmem:[%s5267_s2 + $0x284] sm:$0xf]  ;;  %v4500_v25 = vld [vmem:[%s5267_s2 + $0x1a4] sm:$0xf0] }
  0x89   : > { %1948 = vmatmul.bf16.vlgmr.msra.gmra.mxu2 %v5379_v16  ;;  %v5391_v31 = vpack.c.b16 %v622_v20, %v622_v20  ;;  %v5393_v32 = vpack.c.b16 %v623_v21, %v623_v21  ;;  %v3483_v42 = vld [vmem:[%s5267_s2 + $0x2a0] sm:$0xf0]  ;;  %v3394_v21 = vor.u32 %v4508_v8, %v3393_v7  ;;  %v3617_v26 = vld [vmem:[%s5267_s2 + $0x388] sm:$0xf] }
  0x8a   : > { %1992 = vmatpush.bf16.msrb.mxu2 %v3902_v43  ;;  %1967 = vmatpush.bf16.msrb.mxu0 %v3358_v53  ;;  %v4591_v43 = vld [vmem:[%s5267_s2 + $0x484] sm:$0xf]  ;;  %v3486_v48 = vor.u32 %v4527_v40, %v3483_v42  ;;  %v4564_v28 = vld [vmem:[%s5267_s2 + $0x3a4] sm:$0xf0] }
  0x8b   : > { %1961 = vmatmul.bf16.vlgmr.msra.gmra.mxu3 %v5381_v17  ;;  %1935 = vmatmul.bf16.vlgmr.msra.gmra.mxu1 %v5393_v32  ;;  %v3995_v46 = vld [vmem:[%s5267_s2 + $0x6a0] sm:$0xf0]  ;;  %v3742_v49 = vor.u32 %v4591_v43, %v3739_v44  ;;  %v3873_v29 = vld [vmem:[%s5267_s2 + $0x588] sm:$0xf] }
  0x8c   : > { %2005 = vmatpush.bf16.msrb.mxu3 %v4158_v47  ;;  %1980 = vmatpush.bf16.msrb.mxu1 %v3614_v54  ;;  %v3230_v47 = vor.u32 %v4463_v38, %v3227_v39  ;;  %v4455_v50 = vld [vmem:[%s5267_s2 + $0x44] sm:$0xf]  ;;  %v3998_v53 = vor.u32 %v4655_v45, %v3995_v46  ;;  %v4628_v30 = vld [vmem:[%s5267_s2 + $0x5a4] sm:$0xf0] }
  0x8d   : > { %1922 = vmatmul.bf16.vlgmr.msra.gmra.mxu0 %v5391_v31  ;;  %v3195_v51 = vld [vmem:[%s5267_s2 + $0x60] sm:$0xf0]  ;;  %v4129_v33 = vld [vmem:[%s5267_s2 + $0x788] sm:$0xf] }
  0x8e   : > { %1993 = vmatpush.bf16.msrb.mxu2 %v3870_v55  ;;  %1968 = vmatpush.bf16.msrb.mxu0 %v3326_v1  ;;  %v4519_v52 = vld [vmem:[%s5267_s2 + $0x244] sm:$0xf]  ;;  %v4692_v34 = vld [vmem:[%s5267_s2 + $0x7a4] sm:$0xf0] }
  0x8f   : > { %v3451_v54 = vld [vmem:[%s5267_s2 + $0x260] sm:$0xf0]  ;;  %v3329_v38 = vld [vmem:[%s5267_s2 + $0x148] sm:$0xf] }
  0x90   : > { %2006 = vmatpush.bf16.msrb.mxu3 %v4126_v59  ;;  %1981 = vmatpush.bf16.msrb.mxu1 %v3582_v3  ;;  %v4583_v55 = vld [vmem:[%s5267_s2 + $0x444] sm:$0xf]  ;;  %v3198_v59 = vor.u32 %v4455_v50, %v3195_v51  ;;  %v3454_v62 = vor.u32 %v4519_v52, %v3451_v54  ;;  %v4492_v39 = vld [vmem:[%s5267_s2 + $0x164] sm:$0xf0] }
  0x91   : > { %v3707_v56 = vld [vmem:[%s5267_s2 + $0x460] sm:$0xf0]  ;;  %v3585_v40 = vld [vmem:[%s5267_s2 + $0x348] sm:$0xf] }
  0x92   : > { %1994 = vmatpush.bf16.msrb.mxu2 %v3838_v4  ;;  %1969 = vmatpush.bf16.msrb.mxu0 %v3294_v19  ;;  %v4647_v57 = vld [vmem:[%s5267_s2 + $0x644] sm:$0xf]  ;;  %v3710_v63 = vor.u32 %v4583_v55, %v3707_v56  ;;  %v4700_v19 = vld [vmem:[%s5267_s2 + $0x7e4] sm:$0xf0] }
  0x93   : > { %v3963_v58 = vld [vmem:[%s5267_s2 + $0x660] sm:$0xf0]  ;;  %v4556_v42 = vld [vmem:[%s5267_s2 + $0x364] sm:$0xf0] }
  0x94   : > { %2007 = vmatpush.bf16.msrb.mxu3 %v4094_v10  ;;  %1982 = vmatpush.bf16.msrb.mxu1 %v3550_v22  ;;  %v4447_v60 = vld [vmem:[%s5267_s2 + $0x4] sm:$0xf]  ;;  %v3966_v3 = vor.u32 %v4647_v57, %v3963_v58  ;;  %v3650_v22 = vor.u32 %v4572_v11, %v3649_v9  ;;  %v3841_v43 = vld [vmem:[%s5267_s2 + $0x548] sm:$0xf] }
  0x95   : > { %v3163_v61 = vld [vmem:[%s5267_s2 + $0x20] sm:$0xf0]  ;;  %v4620_v44 = vld [vmem:[%s5267_s2 + $0x564] sm:$0xf0] }
  0x96   : > { %1995 = vmatpush.bf16.msrb.mxu2 %v3806_v23  ;;  %1970 = vmatpush.bf16.msrb.mxu0 %v3262_v35  ;;  %v4511_v0 = vld [vmem:[%s5267_s2 + $0x204] sm:$0xf]  ;;  %v3166_v10 = vor.u32 %v4447_v60, %v3163_v61  ;;  %v3906_v23 = vor.u32 %v4636_v13, %v3905_v12  ;;  %v3362_v35 = vor.u32 %v4500_v25, %v3361_v24  ;;  %v4097_v45 = vld [vmem:[%s5267_s2 + $0x748] sm:$0xf] }
  0x97   : > { %v3419_v1 = vld [vmem:[%s5267_s2 + $0x220] sm:$0xf0]  ;;  %v4684_v46 = vld [vmem:[%s5267_s2 + $0x764] sm:$0xf0] }
  0x98   : > { %2008 = vmatpush.bf16.msrb.mxu3 %v4062_v27  ;;  %1983 = vmatpush.bf16.msrb.mxu1 %v3518_v36  ;;  %v4575_v2 = vld [vmem:[%s5267_s2 + $0x404] sm:$0xf]  ;;  %v3422_v14 = vor.u32 %v4511_v0, %v3419_v1  ;;  %v4162_v27 = vor.u32 %v4700_v19, %v4161_v18  ;;  %v3618_v36 = vor.u32 %v4564_v28, %v3617_v26  ;;  %v3297_v50 = vld [vmem:[%s5267_s2 + $0x108] sm:$0xf] }
  0x99   : > { %v3675_v4 = vld [vmem:[%s5267_s2 + $0x420] sm:$0xf0]  ;;  %v4484_v51 = vld [vmem:[%s5267_s2 + $0x124] sm:$0xf0] }
  0x9a   : > { %1996 = vmatpush.bf16.msrb.mxu2 %v3774_v37  ;;  %1971 = vmatpush.bf16.msrb.mxu0 %v3230_v47  ;;  %v4639_v5 = vld [vmem:[%s5267_s2 + $0x604] sm:$0xf]  ;;  %v3678_v15 = vor.u32 %v4575_v2, %v3675_v4  ;;  %v3874_v37 = vor.u32 %v4628_v30, %v3873_v29  ;;  %v3330_v47 = vor.u32 %v4492_v39, %v3329_v38  ;;  %v3553_v52 = vld [vmem:[%s5267_s2 + $0x308] sm:$0xf] }
  0x9b   : > { %v3931_v6 = vld [vmem:[%s5267_s2 + $0x620] sm:$0xf0]  ;;  %v4548_v54 = vld [vmem:[%s5267_s2 + $0x324] sm:$0xf0] }
  0x9c   : > { %2009 = vmatpush.bf16.msrb.mxu3 %v4030_v41  ;;  %1984 = vmatpush.bf16.msrb.mxu1 %v3486_v48  ;;  %v3934_v20 = vor.u32 %v4639_v5, %v3931_v6  ;;  %v4130_v41 = vor.u32 %v4692_v34, %v4129_v33  ;;  %v3586_v48 = vor.u32 %v4556_v42, %v3585_v40  ;;  %v3809_v55 = vld [vmem:[%s5267_s2 + $0x508] sm:$0xf] }
  0x9d   : > { %v4612_v56 = vld [vmem:[%s5267_s2 + $0x524] sm:$0xf0]  ;;  %v3554_v60 = vor.u32 %v4548_v54, %v3553_v52  ;;  %v4632_v52 = vld [vmem:[%s5267_s2 + $0x5cc] sm:$0xf] }
  0x9e   : > { %1997 = vmatpush.bf16.msrb.mxu2 %v3742_v49  ;;  %1972 = vmatpush.bf16.msrb.mxu0 %v3198_v59  ;;  %v3842_v49 = vor.u32 %v4620_v44, %v3841_v43  ;;  %v4065_v57 = vld [vmem:[%s5267_s2 + $0x708] sm:$0xf]  ;;  %v3298_v59 = vor.u32 %v4484_v51, %v3297_v50  ;;  %v3810_v61 = vor.u32 %v4612_v56, %v3809_v55  ;;  %v3651_v51 = vld [vmem:[%s5267_s2 + $0x3e8] sm:$0xf0] }
  0x9f   : > { %v4676_v58 = vld [vmem:[%s5267_s2 + $0x724] sm:$0xf0]  ;;  %v4696_v56 = vld [vmem:[%s5267_s2 + $0x7cc] sm:$0xf] }
  0xa0   : > { %2010 = vmatpush.bf16.msrb.mxu3 %v3998_v53  ;;  %1985 = vmatpush.bf16.msrb.mxu1 %v3454_v62  ;;  %v4098_v53 = vor.u32 %v4684_v46, %v4097_v45  ;;  %v3265_v62 = vld [vmem:[%s5267_s2 + $0xc8] sm:$0xf]  ;;  %v4066_v1 = vor.u32 %v4676_v58, %v4065_v57  ;;  %v4163_v57 = vld [vmem:[%s5267_s2 + $0x7e8] sm:$0xf0] }
  0xa1   : > { %v3521_v0 = vld [vmem:[%s5267_s2 + $0x2c8] sm:$0xf] }
  0xa2   : > { %1998 = vmatpush.bf16.msrb.mxu2 %v3710_v63  ;;  %1973 = vmatpush.bf16.msrb.mxu0 %v3166_v10  ;;  %v4476_v63 = vld [vmem:[%s5267_s2 + $0xe4] sm:$0xf0] }
  0xa3   : > { %v4540_v2 = vld [vmem:[%s5267_s2 + $0x2e4] sm:$0xf0]  ;;  %v3266_v7 = vor.u32 %v4476_v63, %v3265_v62  ;;  %v4496_v62 = vld [vmem:[%s5267_s2 + $0x18c] sm:$0xf] }
  0xa4   : > { %2011 = vmatpush.bf16.msrb.mxu3 %v3966_v3  ;;  %1986 = vmatpush.bf16.msrb.mxu1 %v3422_v14  ;;  %v3777_v3 = vld [vmem:[%s5267_s2 + $0x4c8] sm:$0xf]  ;;  %v3522_v8 = vor.u32 %v4540_v2, %v3521_v0  ;;  %v3363_v63 = vld [vmem:[%s5267_s2 + $0x1a8] sm:$0xf0] }
  0xa5   : > { %1974 = vmatmul.bf16.vlgmr.msrb.gmra.mxu0 %v5391_v31  ;;  %v4604_v4 = vld [vmem:[%s5267_s2 + $0x4e4] sm:$0xf0]  ;;  %v4560_v0 = vld [vmem:[%s5267_s2 + $0x38c] sm:$0xf] }
  0xa6   : > { %1999 = vmatpush.bf16.msrb.mxu2 %v3678_v15  ;;  %2018 = vmatpush.bf16.msra.mxu0 %v3394_v21  ;;  %v4033_v5 = vld [vmem:[%s5267_s2 + $0x6c8] sm:$0xf]  ;;  %v3778_v9 = vor.u32 %v4604_v4, %v3777_v3  ;;  %v3619_v2 = vld [vmem:[%s5267_s2 + $0x3a8] sm:$0xf0] }
  0xa7   : > { %1987 = vmatmul.bf16.vlgmr.msrb.gmra.mxu1 %v5393_v32  ;;  %v4668_v6 = vld [vmem:[%s5267_s2 + $0x6e4] sm:$0xf0]  ;;  %v4624_v3 = vld [vmem:[%s5267_s2 + $0x58c] sm:$0xf] }
  0xa8   : > { %2012 = vmatpush.bf16.msrb.mxu3 %v3934_v20  ;;  %2031 = vmatpush.bf16.msra.mxu1 %v3650_v22  ;;  %v3233_v10 = vld [vmem:[%s5267_s2 + $0x88] sm:$0xf]  ;;  %v4034_v13 = vor.u32 %v4668_v6, %v4033_v5  ;;  %v3875_v4 = vld [vmem:[%s5267_s2 + $0x5a8] sm:$0xf0] }
  0xa9   : > { %2000 = vmatmul.bf16.vlgmr.msrb.gmra.mxu2 %v5379_v16  ;;  %v4468_v11 = vld [vmem:[%s5267_s2 + $0xa4] sm:$0xf0]  ;;  %v4688_v5 = vld [vmem:[%s5267_s2 + $0x78c] sm:$0xf] }
  0xaa   : > { %2044 = vmatpush.bf16.msra.mxu2 %v3906_v23  ;;  %2019 = vmatpush.bf16.msra.mxu0 %v3362_v35  ;;  %v3489_v12 = vld [vmem:[%s5267_s2 + $0x288] sm:$0xf]  ;;  %v3234_v21 = vor.u32 %v4468_v11, %v3233_v10  ;;  %v4131_v6 = vld [vmem:[%s5267_s2 + $0x7a8] sm:$0xf0] }
  0xab   : > { %2013 = vmatmul.bf16.vlgmr.msrb.gmra.mxu3 %v5381_v17  ;;  %v4532_v14 = vld [vmem:[%s5267_s2 + $0x2a4] sm:$0xf0]  ;;  %v4488_v10 = vld [vmem:[%s5267_s2 + $0x14c] sm:$0xf] }
  0xac   : > { %2057 = vmatpush.bf16.msra.mxu3 %v4162_v27  ;;  %2032 = vmatpush.bf16.msra.mxu1 %v3618_v36  ;;  %v3745_v15 = vld [vmem:[%s5267_s2 + $0x488] sm:$0xf]  ;;  %v3490_v22 = vor.u32 %v4532_v14, %v3489_v12  ;;  %v3331_v11 = vld [vmem:[%s5267_s2 + $0x168] sm:$0xf0] }
  0xad   : > { %v4596_v18 = vld [vmem:[%s5267_s2 + $0x4a4] sm:$0xf0]  ;;  %v4552_v12 = vld [vmem:[%s5267_s2 + $0x34c] sm:$0xf] }
  0xae   : > { %2045 = vmatpush.bf16.msra.mxu2 %v3874_v37  ;;  %2020 = vmatpush.bf16.msra.mxu0 %v3330_v47  ;;  %v4001_v19 = vld [vmem:[%s5267_s2 + $0x688] sm:$0xf]  ;;  %v3746_v23 = vor.u32 %v4596_v18, %v3745_v15  ;;  %v4504_v47 = vld [vmem:[%s5267_s2 + $0x1cc] sm:$0xf] }
  0xaf   : > { %v4660_v20 = vld [vmem:[%s5267_s2 + $0x6a4] sm:$0xf0]  ;;  %v3587_v14 = vld [vmem:[%s5267_s2 + $0x368] sm:$0xf0] }
  0xb0   : > { %2058 = vmatpush.bf16.msra.mxu3 %v4130_v41  ;;  %2033 = vmatpush.bf16.msra.mxu1 %v3586_v48  ;;  %v3201_v24 = vld [vmem:[%s5267_s2 + $0x48] sm:$0xf]  ;;  %v4002_v27 = vor.u32 %v4660_v20, %v4001_v19  ;;  %v3395_v48 = vld [vmem:[%s5267_s2 + $0x1e8] sm:$0xf0] }
  0xb1   : > { %v4460_v25 = vld [vmem:[%s5267_s2 + $0x64] sm:$0xf0]  ;;  %v4616_v15 = vld [vmem:[%s5267_s2 + $0x54c] sm:$0xf] }
  0xb2   : > { %2046 = vmatpush.bf16.msra.mxu2 %v3842_v49  ;;  %2021 = vmatpush.bf16.msra.mxu0 %v3298_v59  ;;  %v3457_v26 = vld [vmem:[%s5267_s2 + $0x248] sm:$0xf]  ;;  %v3202_v35 = vor.u32 %v4460_v25, %v3201_v24  ;;  %v4568_v49 = vld [vmem:[%s5267_s2 + $0x3cc] sm:$0xf]  ;;  %v3398_v59 = vor.u32 %v4504_v47, %v3395_v48 }
  0xb3   : > { %v4524_v28 = vld [vmem:[%s5267_s2 + $0x264] sm:$0xf0]  ;;  %v3843_v18 = vld [vmem:[%s5267_s2 + $0x568] sm:$0xf0] }
  0xb4   : > { %2059 = vmatpush.bf16.msra.mxu3 %v4098_v53  ;;  %2034 = vmatpush.bf16.msra.mxu1 %v3554_v60  ;;  %v3713_v29 = vld [vmem:[%s5267_s2 + $0x448] sm:$0xf]  ;;  %v3458_v38 = vor.u32 %v4524_v28, %v3457_v26  ;;  %v3907_v53 = vld [vmem:[%s5267_s2 + $0x5e8] sm:$0xf0]  ;;  %v3654_v60 = vor.u32 %v4568_v49, %v3651_v51 }
  0xb5   : > { %v4588_v30 = vld [vmem:[%s5267_s2 + $0x464] sm:$0xf0]  ;;  %v4680_v19 = vld [vmem:[%s5267_s2 + $0x74c] sm:$0xf] }
  0xb6   : > { %2047 = vmatpush.bf16.msra.mxu2 %v3810_v61  ;;  %2022 = vmatpush.bf16.msra.mxu0 %v3266_v7  ;;  %v3969_v33 = vld [vmem:[%s5267_s2 + $0x648] sm:$0xf]  ;;  %v3714_v39 = vor.u32 %v4588_v30, %v3713_v29  ;;  %v3910_v61 = vor.u32 %v4632_v52, %v3907_v53  ;;  %v3366_v7 = vor.u32 %v4496_v62, %v3363_v63  ;;  %v4099_v20 = vld [vmem:[%s5267_s2 + $0x768] sm:$0xf0] }
  0xb7   : > { %v4652_v34 = vld [vmem:[%s5267_s2 + $0x664] sm:$0xf0]  ;;  %v4480_v24 = vld [vmem:[%s5267_s2 + $0x10c] sm:$0xf] }
  0xb8   : > { %2060 = vmatpush.bf16.msra.mxu3 %v4066_v1  ;;  %2035 = vmatpush.bf16.msra.mxu1 %v3522_v8  ;;  %v3169_v36 = vld [vmem:[%s5267_s2 + $0x8] sm:$0xf]  ;;  %v3970_v43 = vor.u32 %v4652_v34, %v3969_v33  ;;  %v4166_v1 = vor.u32 %v4696_v56, %v4163_v57  ;;  %v3622_v8 = vor.u32 %v4560_v0, %v3619_v2  ;;  %v3299_v25 = vld [vmem:[%s5267_s2 + $0x128] sm:$0xf0] }
  0xb9   : > { %v4452_v37 = vld [vmem:[%s5267_s2 + $0x24] sm:$0xf0]  ;;  %v4544_v26 = vld [vmem:[%s5267_s2 + $0x30c] sm:$0xf] }
  0xba   : > { %2048 = vmatpush.bf16.msra.mxu2 %v3778_v9  ;;  %2023 = vmatpush.bf16.msra.mxu0 %v3234_v21  ;;  %v3425_v40 = vld [vmem:[%s5267_s2 + $0x208] sm:$0xf]  ;;  %v3170_v50 = vor.u32 %v4452_v37, %v3169_v36  ;;  %v3878_v9 = vor.u32 %v4624_v3, %v3875_v4  ;;  %v3334_v21 = vor.u32 %v4488_v10, %v3331_v11  ;;  %v3555_v28 = vld [vmem:[%s5267_s2 + $0x328] sm:$0xf0] }
  0xbb   : > { %v4516_v41 = vld [vmem:[%s5267_s2 + $0x224] sm:$0xf0]  ;;  %v4608_v29 = vld [vmem:[%s5267_s2 + $0x50c] sm:$0xf]  ;;  %v3558_v36 = vor.u32 %v4544_v26, %v3555_v28  ;;  %v3913_v26 = vld [vmem:[%s5267_s2 + $0x5d0] sm:$0xf] }
  0xbc   : > { %2061 = vmatpush.bf16.msra.mxu3 %v4034_v13  ;;  %2036 = vmatpush.bf16.msra.mxu1 %v3490_v22  ;;  %v3681_v42 = vld [vmem:[%s5267_s2 + $0x408] sm:$0xf]  ;;  %v3426_v54 = vor.u32 %v4516_v41, %v3425_v40  ;;  %v4134_v13 = vor.u32 %v4688_v5, %v4131_v6  ;;  %v3590_v22 = vor.u32 %v4552_v12, %v3587_v14  ;;  %v3811_v30 = vld [vmem:[%s5267_s2 + $0x528] sm:$0xf0] }
  0xbd   : > { %v4580_v44 = vld [vmem:[%s5267_s2 + $0x424] sm:$0xf0]  ;;  %v4672_v33 = vld [vmem:[%s5267_s2 + $0x70c] sm:$0xf]  ;;  %v3814_v37 = vor.u32 %v4608_v29, %v3811_v30  ;;  %v4169_v30 = vld [vmem:[%s5267_s2 + $0x7d0] sm:$0xf] }
  0xbe   : > { %2049 = vmatpush.bf16.msra.mxu2 %v3746_v23  ;;  %v3937_v45 = vld [vmem:[%s5267_s2 + $0x608] sm:$0xf]  ;;  %2024 = vmatpush.bf16.msra.mxu0 %v3202_v35  ;;  %v3682_v55 = vor.u32 %v4580_v44, %v3681_v42  ;;  %v3846_v23 = vor.u32 %v4616_v15, %v3843_v18  ;;  %v4067_v34 = vld [vmem:[%s5267_s2 + $0x728] sm:$0xf0]  ;;  %v3302_v35 = vor.u32 %v4480_v24, %v3299_v25  ;;  %v4573_v25 = vld [vmem:[%s5267_s2 + $0x3ec] sm:$0xf0] }
  0xbf   : > { %v4644_v46 = vld [vmem:[%s5267_s2 + $0x624] sm:$0xf0]  ;;  %v4536_v40 = vld [vmem:[%s5267_s2 + $0x2cc] sm:$0xf]  ;;  %v4070_v41 = vor.u32 %v4672_v33, %v4067_v34  ;;  %v4701_v33 = vld [vmem:[%s5267_s2 + $0x7ec] sm:$0xf0] }
  0xc0   : > { %2062 = vmatpush.bf16.msra.mxu3 %v4002_v27  ;;  %2037 = vmatpush.bf16.msra.mxu1 %v3458_v38  ;;  %v3938_v58 = vor.u32 %v4644_v46, %v3937_v45  ;;  %v4102_v27 = vor.u32 %v4680_v19, %v4099_v20  ;;  %v4472_v38 = vld [vmem:[%s5267_s2 + $0xcc] sm:$0xf] }
  0xc1   : > { %v3523_v42 = vld [vmem:[%s5267_s2 + $0x2e8] sm:$0xf0] }
  0xc2   : > { %2050 = vmatpush.bf16.msra.mxu2 %v3714_v39  ;;  %2025 = vmatpush.bf16.msra.mxu0 %v3170_v50  ;;  %v3267_v39 = vld [vmem:[%s5267_s2 + $0xe8] sm:$0xf0]  ;;  %v3526_v48 = vor.u32 %v4536_v40, %v3523_v42  ;;  %v3625_v40 = vld [vmem:[%s5267_s2 + $0x390] sm:$0xf] }
  0xc3   : > { %v3779_v44 = vld [vmem:[%s5267_s2 + $0x4e8] sm:$0xf0]  ;;  %v3270_v47 = vor.u32 %v4472_v38, %v3267_v39  ;;  %v3369_v38 = vld [vmem:[%s5267_s2 + $0x190] sm:$0xf] }
  0xc4   : > { %2063 = vmatpush.bf16.msra.mxu3 %v3970_v43  ;;  %2038 = vmatpush.bf16.msra.mxu1 %v3426_v54  ;;  %v4600_v43 = vld [vmem:[%s5267_s2 + $0x4cc] sm:$0xf]  ;;  %v4501_v39 = vld [vmem:[%s5267_s2 + $0x1ac] sm:$0xf0] }
  0xc5   : > { %2026 = vmatmul.bf16.vlgmr.msra.gmra.mxu0 %v5391_v31  ;;  %v4664_v45 = vld [vmem:[%s5267_s2 + $0x6cc] sm:$0xf]  ;;  %v3782_v49 = vor.u32 %v4600_v43, %v3779_v44  ;;  %v4565_v42 = vld [vmem:[%s5267_s2 + $0x3ac] sm:$0xf0] }
  0xc6   : > { %2051 = vmatpush.bf16.msra.mxu2 %v3682_v55  ;;  %2070 = vmatpush.bf16.msrb.mxu0 %v3398_v59  ;;  %v4035_v46 = vld [vmem:[%s5267_s2 + $0x6e8] sm:$0xf0]  ;;  %v3881_v43 = vld [vmem:[%s5267_s2 + $0x590] sm:$0xf] }
  0xc7   : > { %2039 = vmatmul.bf16.vlgmr.msra.gmra.mxu1 %v5393_v32  ;;  %v4464_v50 = vld [vmem:[%s5267_s2 + $0x8c] sm:$0xf]  ;;  %v4038_v53 = vor.u32 %v4664_v45, %v4035_v46  ;;  %v4629_v44 = vld [vmem:[%s5267_s2 + $0x5ac] sm:$0xf0] }
  0xc8   : > { %2064 = vmatpush.bf16.msra.mxu3 %v3938_v58  ;;  %2083 = vmatpush.bf16.msrb.mxu1 %v3654_v60  ;;  %v3235_v51 = vld [vmem:[%s5267_s2 + $0xa8] sm:$0xf0]  ;;  %v4137_v45 = vld [vmem:[%s5267_s2 + $0x790] sm:$0xf] }
  0xc9   : > { %2052 = vmatmul.bf16.vlgmr.msra.gmra.mxu2 %v5379_v16  ;;  %v4528_v52 = vld [vmem:[%s5267_s2 + $0x28c] sm:$0xf]  ;;  %v3238_v59 = vor.u32 %v4464_v50, %v3235_v51  ;;  %v4693_v46 = vld [vmem:[%s5267_s2 + $0x7ac] sm:$0xf0] }
  0xca   : > { %2096 = vmatpush.bf16.msrb.mxu2 %v3910_v61  ;;  %2071 = vmatpush.bf16.msrb.mxu0 %v3366_v7  ;;  %v3491_v54 = vld [vmem:[%s5267_s2 + $0x2a8] sm:$0xf0]  ;;  %v3337_v50 = vld [vmem:[%s5267_s2 + $0x150] sm:$0xf] }
  0xcb   : > { %2065 = vmatmul.bf16.vlgmr.msra.gmra.mxu3 %v5381_v17  ;;  %v4592_v55 = vld [vmem:[%s5267_s2 + $0x48c] sm:$0xf]  ;;  %v3494_v60 = vor.u32 %v4528_v52, %v3491_v54  ;;  %v4493_v51 = vld [vmem:[%s5267_s2 + $0x16c] sm:$0xf0] }
  0xcc   : > { %2109 = vmatpush.bf16.msrb.mxu3 %v4166_v1  ;;  %2084 = vmatpush.bf16.msrb.mxu1 %v3622_v8  ;;  %v3747_v56 = vld [vmem:[%s5267_s2 + $0x4a8] sm:$0xf0]  ;;  %v3593_v52 = vld [vmem:[%s5267_s2 + $0x350] sm:$0xf] }
  0xcd   : > { %v4656_v57 = vld [vmem:[%s5267_s2 + $0x68c] sm:$0xf]  ;;  %v3750_v61 = vor.u32 %v4592_v55, %v3747_v56  ;;  %v4557_v54 = vld [vmem:[%s5267_s2 + $0x36c] sm:$0xf0] }
  0xce   : > { %2097 = vmatpush.bf16.msrb.mxu2 %v3878_v9  ;;  %2072 = vmatpush.bf16.msrb.mxu0 %v3334_v21  ;;  %v4003_v58 = vld [vmem:[%s5267_s2 + $0x6a8] sm:$0xf0]  ;;  %v3401_v21 = vld [vmem:[%s5267_s2 + $0x1d0] sm:$0xf] }
  0xcf   : > { %v4456_v62 = vld [vmem:[%s5267_s2 + $0x4c] sm:$0xf]  ;;  %v4006_v1 = vor.u32 %v4656_v57, %v4003_v58  ;;  %v3849_v55 = vld [vmem:[%s5267_s2 + $0x550] sm:$0xf] }
  0xd0   : > { %2110 = vmatpush.bf16.msrb.mxu3 %v4134_v13  ;;  %2085 = vmatpush.bf16.msrb.mxu1 %v3590_v22  ;;  %v3203_v63 = vld [vmem:[%s5267_s2 + $0x68] sm:$0xf0]  ;;  %v4509_v22 = vld [vmem:[%s5267_s2 + $0x1ec] sm:$0xf0] }
  0xd1   : > { %v4520_v0 = vld [vmem:[%s5267_s2 + $0x24c] sm:$0xf]  ;;  %v3206_v7 = vor.u32 %v4456_v62, %v3203_v63  ;;  %v4621_v56 = vld [vmem:[%s5267_s2 + $0x56c] sm:$0xf0] }
  0xd2   : > { %2098 = vmatpush.bf16.msrb.mxu2 %v3846_v23  ;;  %2073 = vmatpush.bf16.msrb.mxu0 %v3302_v35  ;;  %v3459_v2 = vld [vmem:[%s5267_s2 + $0x268] sm:$0xf0]  ;;  %v3657_v23 = vld [vmem:[%s5267_s2 + $0x3d0] sm:$0xf]  ;;  %v3402_v35 = vor.u32 %v4509_v22, %v3401_v21 }
  0xd3   : > { %v4584_v3 = vld [vmem:[%s5267_s2 + $0x44c] sm:$0xf]  ;;  %v3462_v10 = vor.u32 %v4520_v0, %v3459_v2  ;;  %v4105_v57 = vld [vmem:[%s5267_s2 + $0x750] sm:$0xf] }
  0xd4   : > { %2111 = vmatpush.bf16.msrb.mxu3 %v4102_v27  ;;  %2086 = vmatpush.bf16.msrb.mxu1 %v3558_v36  ;;  %v3715_v4 = vld [vmem:[%s5267_s2 + $0x468] sm:$0xf0]  ;;  %v4637_v27 = vld [vmem:[%s5267_s2 + $0x5ec] sm:$0xf0]  ;;  %v3658_v36 = vor.u32 %v4573_v25, %v3657_v23 }
  0xd5   : > { %v4648_v5 = vld [vmem:[%s5267_s2 + $0x64c] sm:$0xf]  ;;  %v3718_v11 = vor.u32 %v4584_v3, %v3715_v4  ;;  %v4685_v58 = vld [vmem:[%s5267_s2 + $0x76c] sm:$0xf0] }
  0xd6   : > { %2099 = vmatpush.bf16.msrb.mxu2 %v3814_v37  ;;  %2074 = vmatpush.bf16.msrb.mxu0 %v3270_v47  ;;  %v3971_v6 = vld [vmem:[%s5267_s2 + $0x668] sm:$0xf0]  ;;  %v3914_v37 = vor.u32 %v4637_v27, %v3913_v26  ;;  %v3370_v47 = vor.u32 %v4501_v39, %v3369_v38  ;;  %v3305_v62 = vld [vmem:[%s5267_s2 + $0x110] sm:$0xf] }
  0xd7   : > { %v4448_v8 = vld [vmem:[%s5267_s2 + $0xc] sm:$0xf]  ;;  %v3974_v15 = vor.u32 %v4648_v5, %v3971_v6  ;;  %v4485_v63 = vld [vmem:[%s5267_s2 + $0x12c] sm:$0xf0] }
  0xd8   : > { %2112 = vmatpush.bf16.msrb.mxu3 %v4070_v41  ;;  %2087 = vmatpush.bf16.msrb.mxu1 %v3526_v48  ;;  %v3171_v9 = vld [vmem:[%s5267_s2 + $0x28] sm:$0xf0]  ;;  %v4170_v41 = vor.u32 %v4701_v33, %v4169_v30  ;;  %v3626_v48 = vor.u32 %v4565_v42, %v3625_v40  ;;  %v3561_v0 = vld [vmem:[%s5267_s2 + $0x310] sm:$0xf] }
  0xd9   : > { %v4512_v12 = vld [vmem:[%s5267_s2 + $0x20c] sm:$0xf]  ;;  %v3174_v24 = vor.u32 %v4448_v8, %v3171_v9  ;;  %v4549_v2 = vld [vmem:[%s5267_s2 + $0x32c] sm:$0xf0] }
  0xda   : > { %2100 = vmatpush.bf16.msrb.mxu2 %v3782_v49  ;;  %2075 = vmatpush.bf16.msrb.mxu0 %v3238_v59  ;;  %v3427_v13 = vld [vmem:[%s5267_s2 + $0x228] sm:$0xf0]  ;;  %v3882_v49 = vor.u32 %v4629_v44, %v3881_v43  ;;  %v3338_v59 = vor.u32 %v4493_v51, %v3337_v50  ;;  %v3817_v3 = vld [vmem:[%s5267_s2 + $0x510] sm:$0xf]  ;;  %v3562_v8 = vor.u32 %v4549_v2, %v3561_v0  ;;  %v4633_v0 = vld [vmem:[%s5267_s2 + $0x5d4] sm:$0xf] }
  0xdb   : > { %v4576_v14 = vld [vmem:[%s5267_s2 + $0x40c] sm:$0xf]  ;;  %v3430_v28 = vor.u32 %v4512_v12, %v3427_v13  ;;  %v4613_v4 = vld [vmem:[%s5267_s2 + $0x52c] sm:$0xf0] }
  0xdc   : > { %2113 = vmatpush.bf16.msrb.mxu3 %v4038_v53  ;;  %2088 = vmatpush.bf16.msrb.mxu1 %v3494_v60  ;;  %v3683_v18 = vld [vmem:[%s5267_s2 + $0x428] sm:$0xf0]  ;;  %v4138_v53 = vor.u32 %v4693_v46, %v4137_v45  ;;  %v3594_v60 = vor.u32 %v4557_v54, %v3593_v52  ;;  %v4073_v5 = vld [vmem:[%s5267_s2 + $0x710] sm:$0xf]  ;;  %v3818_v9 = vor.u32 %v4613_v4, %v3817_v3  ;;  %v4697_v4 = vld [vmem:[%s5267_s2 + $0x7d4] sm:$0xf] }
  0xdd   : > { %v4640_v19 = vld [vmem:[%s5267_s2 + $0x60c] sm:$0xf]  ;;  %v3686_v29 = vor.u32 %v4576_v14, %v3683_v18  ;;  %v4677_v6 = vld [vmem:[%s5267_s2 + $0x72c] sm:$0xf0] }
  0xde   : > { %2101 = vmatpush.bf16.msrb.mxu2 %v3750_v61  ;;  %v3939_v20 = vld [vmem:[%s5267_s2 + $0x628] sm:$0xf0]  ;;  %2076 = vmatpush.bf16.msrb.mxu0 %v3206_v7  ;;  %v3850_v61 = vor.u32 %v4621_v56, %v3849_v55  ;;  %v3306_v7 = vor.u32 %v4485_v63, %v3305_v62  ;;  %v3529_v12 = vld [vmem:[%s5267_s2 + $0x2d0] sm:$0xf]  ;;  %v4074_v13 = vor.u32 %v4677_v6, %v4073_v5  ;;  %v3659_v63 = vld [vmem:[%s5267_s2 + $0x3f0] sm:$0xf0] }
  0xdf   : > { %v3942_v34 = vor.u32 %v4640_v19, %v3939_v20  ;;  %v4541_v14 = vld [vmem:[%s5267_s2 + $0x2ec] sm:$0xf0]  ;;  %v4171_v5 = vld [vmem:[%s5267_s2 + $0x7f0] sm:$0xf0] }
  0xe0   : > { %2114 = vmatpush.bf16.msrb.mxu3 %v4006_v1  ;;  %2089 = vmatpush.bf16.msrb.mxu1 %v3462_v10  ;;  %v4106_v1 = vor.u32 %v4685_v58, %v4105_v57  ;;  %v3273_v10 = vld [vmem:[%s5267_s2 + $0xd0] sm:$0xf]  ;;  %v3530_v22 = vor.u32 %v4541_v14, %v3529_v12  ;;  %v4561_v12 = vld [vmem:[%s5267_s2 + $0x394] sm:$0xf] }
  0xe1   : > { %v4605_v18 = vld [vmem:[%s5267_s2 + $0x4ec] sm:$0xf0]  ;;  %v3627_v14 = vld [vmem:[%s5267_s2 + $0x3b0] sm:$0xf0] }
  0xe2   : > { %2102 = vmatpush.bf16.msrb.mxu2 %v3718_v11  ;;  %2077 = vmatpush.bf16.msrb.mxu0 %v3174_v24  ;;  %v4477_v11 = vld [vmem:[%s5267_s2 + $0xec] sm:$0xf0] }
  0xe3   : > { %v4041_v19 = vld [vmem:[%s5267_s2 + $0x6d0] sm:$0xf]  ;;  %v3274_v21 = vor.u32 %v4477_v11, %v3273_v10  ;;  %v4497_v10 = vld [vmem:[%s5267_s2 + $0x194] sm:$0xf] }
  0xe4   : > { %2115 = vmatpush.bf16.msrb.mxu3 %v3974_v15  ;;  %2090 = vmatpush.bf16.msrb.mxu1 %v3430_v28  ;;  %v3785_v15 = vld [vmem:[%s5267_s2 + $0x4d0] sm:$0xf]  ;;  %v3371_v11 = vld [vmem:[%s5267_s2 + $0x1b0] sm:$0xf0] }
  0xe5   : > { %2078 = vmatmul.bf16.vlgmr.msrb.gmra.mxu0 %v5391_v31  ;;  %v4669_v20 = vld [vmem:[%s5267_s2 + $0x6ec] sm:$0xf0]  ;;  %v3786_v23 = vor.u32 %v4605_v18, %v3785_v15  ;;  %v4625_v15 = vld [vmem:[%s5267_s2 + $0x594] sm:$0xf] }
  0xe6   : > { %2103 = vmatpush.bf16.msrb.mxu2 %v3686_v29  ;;  %2122 = vmatpush.bf16.msra.mxu0 %v3402_v35  ;;  %v3241_v24 = vld [vmem:[%s5267_s2 + $0x90] sm:$0xf]  ;;  %v4042_v27 = vor.u32 %v4669_v20, %v4041_v19  ;;  %v3883_v18 = vld [vmem:[%s5267_s2 + $0x5b0] sm:$0xf0] }
  0xe7   : > { %2091 = vmatmul.bf16.vlgmr.msrb.gmra.mxu1 %v5393_v32  ;;  %v4469_v25 = vld [vmem:[%s5267_s2 + $0xac] sm:$0xf0]  ;;  %v4689_v19 = vld [vmem:[%s5267_s2 + $0x794] sm:$0xf] }
  0xe8   : > { %2116 = vmatpush.bf16.msrb.mxu3 %v3942_v34  ;;  %2135 = vmatpush.bf16.msra.mxu1 %v3658_v36  ;;  %v3497_v26 = vld [vmem:[%s5267_s2 + $0x290] sm:$0xf]  ;;  %v3242_v35 = vor.u32 %v4469_v25, %v3241_v24  ;;  %v4139_v20 = vld [vmem:[%s5267_s2 + $0x7b0] sm:$0xf0] }
  0xe9   : > { %2104 = vmatmul.bf16.vlgmr.msrb.gmra.mxu2 %v5379_v16  ;;  %v4533_v28 = vld [vmem:[%s5267_s2 + $0x2ac] sm:$0xf0]  ;;  %v4489_v24 = vld [vmem:[%s5267_s2 + $0x154] sm:$0xf] }
  0xea   : > { %2148 = vmatpush.bf16.msra.mxu2 %v3914_v37  ;;  %2123 = vmatpush.bf16.msra.mxu0 %v3370_v47  ;;  %v3753_v29 = vld [vmem:[%s5267_s2 + $0x490] sm:$0xf]  ;;  %v3498_v36 = vor.u32 %v4533_v28, %v3497_v26  ;;  %v3339_v25 = vld [vmem:[%s5267_s2 + $0x170] sm:$0xf0] }
  0xeb   : > { %2117 = vmatmul.bf16.vlgmr.msrb.gmra.mxu3 %v5381_v17  ;;  %v4597_v30 = vld [vmem:[%s5267_s2 + $0x4ac] sm:$0xf0]  ;;  %v4553_v26 = vld [vmem:[%s5267_s2 + $0x354] sm:$0xf] }
  0xec   : > { %2161 = vmatpush.bf16.msra.mxu3 %v4170_v41  ;;  %2136 = vmatpush.bf16.msra.mxu1 %v3626_v48  ;;  %v4009_v33 = vld [vmem:[%s5267_s2 + $0x690] sm:$0xf]  ;;  %v3754_v37 = vor.u32 %v4597_v30, %v3753_v29  ;;  %v3595_v28 = vld [vmem:[%s5267_s2 + $0x370] sm:$0xf0] }
  0xed   : > { %v4661_v34 = vld [vmem:[%s5267_s2 + $0x6ac] sm:$0xf0]  ;;  %v4617_v29 = vld [vmem:[%s5267_s2 + $0x554] sm:$0xf] }
  0xee   : > { %2149 = vmatpush.bf16.msra.mxu2 %v3882_v49  ;;  %2124 = vmatpush.bf16.msra.mxu0 %v3338_v59  ;;  %v3209_v38 = vld [vmem:[%s5267_s2 + $0x50] sm:$0xf]  ;;  %v4010_v41 = vor.u32 %v4661_v34, %v4009_v33  ;;  %v4505_v59 = vld [vmem:[%s5267_s2 + $0x1d4] sm:$0xf] }
  0xef   : > { %v4461_v39 = vld [vmem:[%s5267_s2 + $0x6c] sm:$0xf0]  ;;  %v3851_v30 = vld [vmem:[%s5267_s2 + $0x570] sm:$0xf0] }
  0xf0   : > { %2162 = vmatpush.bf16.msra.mxu3 %v4138_v53  ;;  %2137 = vmatpush.bf16.msra.mxu1 %v3594_v60  ;;  %v3465_v40 = vld [vmem:[%s5267_s2 + $0x250] sm:$0xf]  ;;  %v3210_v47 = vor.u32 %v4461_v39, %v3209_v38  ;;  %v3403_v60 = vld [vmem:[%s5267_s2 + $0x1f0] sm:$0xf0] }
  0xf1   : > { %v4525_v42 = vld [vmem:[%s5267_s2 + $0x26c] sm:$0xf0]  ;;  %v4681_v33 = vld [vmem:[%s5267_s2 + $0x754] sm:$0xf] }
  0xf2   : > { %2150 = vmatpush.bf16.msra.mxu2 %v3850_v61  ;;  %2125 = vmatpush.bf16.msra.mxu0 %v3306_v7  ;;  %v3721_v43 = vld [vmem:[%s5267_s2 + $0x450] sm:$0xf]  ;;  %v3466_v50 = vor.u32 %v4525_v42, %v3465_v40  ;;  %v4569_v61 = vld [vmem:[%s5267_s2 + $0x3d4] sm:$0xf]  ;;  %v3406_v7 = vor.u32 %v4505_v59, %v3403_v60 }
  0xf3   : > { %v4589_v44 = vld [vmem:[%s5267_s2 + $0x46c] sm:$0xf0]  ;;  %v4107_v34 = vld [vmem:[%s5267_s2 + $0x770] sm:$0xf0] }
  0xf4   : > { %2163 = vmatpush.bf16.msra.mxu3 %v4106_v1  ;;  %2138 = vmatpush.bf16.msra.mxu1 %v3562_v8  ;;  %v3977_v45 = vld [vmem:[%s5267_s2 + $0x650] sm:$0xf]  ;;  %v3722_v51 = vor.u32 %v4589_v44, %v3721_v43  ;;  %v3915_v1 = vld [vmem:[%s5267_s2 + $0x5f0] sm:$0xf0]  ;;  %v3662_v8 = vor.u32 %v4569_v61, %v3659_v63 }
  0xf5   : > { %v4653_v46 = vld [vmem:[%s5267_s2 + $0x66c] sm:$0xf0]  ;;  %v4481_v38 = vld [vmem:[%s5267_s2 + $0x114] sm:$0xf] }
  0xf6   : > { %2151 = vmatpush.bf16.msra.mxu2 %v3818_v9  ;;  %2126 = vmatpush.bf16.msra.mxu0 %v3274_v21  ;;  %v3177_v48 = vld [vmem:[%s5267_s2 + $0x10] sm:$0xf]  ;;  %v3978_v55 = vor.u32 %v4653_v46, %v3977_v45  ;;  %v3918_v9 = vor.u32 %v4633_v0, %v3915_v1  ;;  %v3374_v21 = vor.u32 %v4497_v10, %v3371_v11  ;;  %v3307_v39 = vld [vmem:[%s5267_s2 + $0x130] sm:$0xf0] }
  0xf7   : > { %v4453_v49 = vld [vmem:[%s5267_s2 + $0x2c] sm:$0xf0]  ;;  %v4545_v40 = vld [vmem:[%s5267_s2 + $0x314] sm:$0xf] }
  0xf8   : > { %2164 = vmatpush.bf16.msra.mxu3 %v4074_v13  ;;  %2139 = vmatpush.bf16.msra.mxu1 %v3530_v22  ;;  %v3433_v52 = vld [vmem:[%s5267_s2 + $0x210] sm:$0xf]  ;;  %v3178_v62 = vor.u32 %v4453_v49, %v3177_v48  ;;  %v4174_v13 = vor.u32 %v4697_v4, %v4171_v5  ;;  %v3630_v22 = vor.u32 %v4561_v12, %v3627_v14  ;;  %v3563_v42 = vld [vmem:[%s5267_s2 + $0x330] sm:$0xf0] }
  0xf9   : > { %v4517_v53 = vld [vmem:[%s5267_s2 + $0x22c] sm:$0xf0]  ;;  %v4609_v43 = vld [vmem:[%s5267_s2 + $0x514] sm:$0xf]  ;;  %v3566_v48 = vor.u32 %v4545_v40, %v3563_v42  ;;  %v4510_v42 = vld [vmem:[%s5267_s2 + $0x1f4] sm:$0xf0] }
  0xfa   : > { %2152 = vmatpush.bf16.msra.mxu2 %v3786_v23  ;;  %2127 = vmatpush.bf16.msra.mxu0 %v3242_v35  ;;  %v3689_v54 = vld [vmem:[%s5267_s2 + $0x410] sm:$0xf]  ;;  %v3434_v2 = vor.u32 %v4517_v53, %v3433_v52  ;;  %v3886_v23 = vor.u32 %v4625_v15, %v3883_v18  ;;  %v3342_v35 = vor.u32 %v4489_v24, %v3339_v25  ;;  %v3819_v44 = vld [vmem:[%s5267_s2 + $0x530] sm:$0xf0] }
  0xfb   : > { %v4581_v56 = vld [vmem:[%s5267_s2 + $0x42c] sm:$0xf0]  ;;  %v4673_v45 = vld [vmem:[%s5267_s2 + $0x714] sm:$0xf]  ;;  %v3822_v49 = vor.u32 %v4609_v43, %v3819_v44  ;;  %v3665_v43 = vld [vmem:[%s5267_s2 + $0x3d8] sm:$0xf] }
  0xfc   : > { %2165 = vmatpush.bf16.msra.mxu3 %v4042_v27  ;;  %2140 = vmatpush.bf16.msra.mxu1 %v3498_v36  ;;  %v3945_v57 = vld [vmem:[%s5267_s2 + $0x610] sm:$0xf]  ;;  %v3690_v3 = vor.u32 %v4581_v56, %v3689_v54  ;;  %v4142_v27 = vor.u32 %v4689_v19, %v4139_v20  ;;  %v3598_v36 = vor.u32 %v4553_v26, %v3595_v28  ;;  %v4075_v46 = vld [vmem:[%s5267_s2 + $0x730] sm:$0xf0] }
  0xfd   : > { %v4645_v58 = vld [vmem:[%s5267_s2 + $0x62c] sm:$0xf0]  ;;  %v4537_v52 = vld [vmem:[%s5267_s2 + $0x2d4] sm:$0xf]  ;;  %v4078_v53 = vor.u32 %v4673_v45, %v4075_v46  ;;  %v4574_v46 = vld [vmem:[%s5267_s2 + $0x3f4] sm:$0xf0] }
  0xfe   : > { %2153 = vmatpush.bf16.msra.mxu2 %v3754_v37  ;;  %2128 = vmatpush.bf16.msra.mxu0 %v3210_v47  ;;  %v3946_v6 = vor.u32 %v4645_v58, %v3945_v57  ;;  %v3854_v37 = vor.u32 %v4617_v29, %v3851_v30  ;;  %v3310_v47 = vor.u32 %v4481_v38, %v3307_v39  ;;  %v3531_v54 = vld [vmem:[%s5267_s2 + $0x2f0] sm:$0xf0]  ;;  %v3409_v39 = vld [vmem:[%s5267_s2 + $0x1d8] sm:$0xf] }
  0xff   : > { %v3787_v56 = vld [vmem:[%s5267_s2 + $0x4f0] sm:$0xf0]  ;;  %v3534_v60 = vor.u32 %v4537_v52, %v3531_v54  ;;  %v4177_v52 = vld [vmem:[%s5267_s2 + $0x7d8] sm:$0xf] }
 0x100   : > { %2166 = vmatpush.bf16.msra.mxu3 %v4010_v41  ;;  %2141 = vmatpush.bf16.msra.mxu1 %v3466_v50  ;;  %v4110_v41 = vor.u32 %v4681_v33, %v4107_v34  ;;  %v4473_v50 = vld [vmem:[%s5267_s2 + $0xd4] sm:$0xf] }
 0x101   : > { %v4665_v57 = vld [vmem:[%s5267_s2 + $0x6d4] sm:$0xf] }
 0x102   : > { %2154 = vmatpush.bf16.msra.mxu2 %v3722_v51  ;;  %2129 = vmatpush.bf16.msra.mxu0 %v3178_v62  ;;  %v3275_v51 = vld [vmem:[%s5267_s2 + $0xf0] sm:$0xf0] }
 0x103   : > { %v4043_v58 = vld [vmem:[%s5267_s2 + $0x6f0] sm:$0xf0]  ;;  %v3278_v59 = vor.u32 %v4473_v50, %v3275_v51 }
 0x104   : > { %2167 = vmatpush.bf16.msra.mxu3 %v3978_v55  ;;  %2142 = vmatpush.bf16.msra.mxu1 %v3434_v2  ;;  %v4601_v55 = vld [vmem:[%s5267_s2 + $0x4d4] sm:$0xf]  ;;  %v4046_v1 = vor.u32 %v4665_v57, %v4043_v58  ;;  %v3377_v57 = vld [vmem:[%s5267_s2 + $0x198] sm:$0xf] }
 0x105   : > { %2130 = vmatmul.bf16.vlgmr.msra.gmra.mxu0 %v5391_v31  ;;  %v3790_v61 = vor.u32 %v4601_v55, %v3787_v56  ;;  %v4465_v62 = vld [vmem:[%s5267_s2 + $0x94] sm:$0xf]  ;;  %v3410_v56 = vor.u32 %v4510_v42, %v3409_v39  ;;  %v3537_v42 = vld [vmem:[%s5267_s2 + $0x2d8] sm:$0xf] }
 0x106   : > { %2155 = vmatpush.bf16.msra.mxu2 %v3690_v3  ;;  %2174 = vmatpush.bf16.msrb.mxu0 %v3406_v7  ;;  %v3243_v63 = vld [vmem:[%s5267_s2 + $0xb0] sm:$0xf0] }
 0x107   : > { %2143 = vmatmul.bf16.vlgmr.msra.gmra.mxu1 %v5393_v32  ;;  %v4529_v0 = vld [vmem:[%s5267_s2 + $0x294] sm:$0xf]  ;;  %v3246_v7 = vor.u32 %v4465_v62, %v3243_v63  ;;  %v3633_v62 = vld [vmem:[%s5267_s2 + $0x398] sm:$0xf] }
 0x108   : > { %2168 = vmatpush.bf16.msra.mxu3 %v3946_v6  ;;  %2187 = vmatpush.bf16.msrb.mxu1 %v3662_v8  ;;  %v3499_v2 = vld [vmem:[%s5267_s2 + $0x2b0] sm:$0xf0]  ;;  %v4566_v63 = vld [vmem:[%s5267_s2 + $0x3b4] sm:$0xf0] }
 0x109   : > { %2156 = vmatmul.bf16.vlgmr.msra.gmra.mxu2 %v5379_v16  ;;  %v4593_v3 = vld [vmem:[%s5267_s2 + $0x494] sm:$0xf]  ;;  %v3502_v8 = vor.u32 %v4529_v0, %v3499_v2  ;;  %v3889_v2 = vld [vmem:[%s5267_s2 + $0x598] sm:$0xf] }
 0x10a   : > { %2200 = vmatpush.bf16.msrb.mxu2 %v3918_v9  ;;  %2175 = vmatpush.bf16.msrb.mxu0 %v3374_v21  ;;  %v3755_v4 = vld [vmem:[%s5267_s2 + $0x4b0] sm:$0xf0] }
 0x10b   : > { %2169 = vmatmul.bf16.vlgmr.msra.gmra.mxu3 %v5381_v17  ;;  %v4657_v5 = vld [vmem:[%s5267_s2 + $0x694] sm:$0xf]  ;;  %v3758_v9 = vor.u32 %v4593_v3, %v3755_v4  ;;  %v4630_v3 = vld [vmem:[%s5267_s2 + $0x5b4] sm:$0xf0] }
 0x10c   : > { %2213 = vmatpush.bf16.msrb.mxu3 %v4174_v13  ;;  %2188 = vmatpush.bf16.msrb.mxu1 %v3630_v22  ;;  %v4011_v6 = vld [vmem:[%s5267_s2 + $0x6b0] sm:$0xf0]  ;;  %v1936_v13 = vpop.f32.mrf.mxu1  ;;  %v1923_v22 = vpop.f32.mrf.mxu0  ;;  %v4145_v4 = vld [vmem:[%s5267_s2 + $0x798] sm:$0xf] }
 0x10d   : > { %v4457_v10 = vld [vmem:[%s5267_s2 + $0x54] sm:$0xf]  ;;  %v4014_v14 = vor.u32 %v4657_v5, %v4011_v6  ;;  %v4694_v5 = vld [vmem:[%s5267_s2 + $0x7b4] sm:$0xf0] }
 0x10e   : > { %2201 = vmatpush.bf16.msrb.mxu2 %v3886_v23  ;;  %2176 = vmatpush.bf16.msrb.mxu0 %v3342_v35  ;;  %v3211_v11 = vld [vmem:[%s5267_s2 + $0x70] sm:$0xf0]  ;;  %v1949_v35 = vpop.f32.mrf.mxu2 }
 0x10f   : > { %v4521_v12 = vld [vmem:[%s5267_s2 + $0x254] sm:$0xf]  ;;  %v3214_v23 = vor.u32 %v4457_v10, %v3211_v11  ;;  %v3890_v10 = vor.u32 %v4630_v3, %v3889_v2  ;;  %v3345_v11 = vld [vmem:[%s5267_s2 + $0x158] sm:$0xf]  ;;  %v355_v2 = vld [vmem:[#allocation2] sm:$0xff] }
 0x110   : > { %2214 = vmatpush.bf16.msrb.mxu3 %v4142_v27  ;;  %2189 = vmatpush.bf16.msrb.mxu1 %v3598_v36  ;;  %v3467_v15 = vld [vmem:[%s5267_s2 + $0x270] sm:$0xf0]  ;;  %v1937_v27 = vadd.f32 %v1936_v13, %v1923_v22  ;;  %v3601_v13 = vld [vmem:[%s5267_s2 + $0x358] sm:$0xf] }
 0x111   : > { %v4585_v18 = vld [vmem:[%s5267_s2 + $0x454] sm:$0xf]  ;;  %v3470_v28 = vor.u32 %v4521_v12, %v3467_v15  ;;  %v4494_v12 = vld [vmem:[%s5267_s2 + $0x174] sm:$0xf0] }
 0x112   : > { %2202 = vmatpush.bf16.msrb.mxu2 %v3854_v37  ;;  %2177 = vmatpush.bf16.msrb.mxu0 %v3310_v47  ;;  %v3723_v19 = vld [vmem:[%s5267_s2 + $0x470] sm:$0xf0]  ;;  %v1950_v40 = vadd.f32 %v1949_v35, %v1937_v27  ;;  %v3921_v47 = vld [vmem:[%s5267_s2 + $0x5d8] sm:$0xf]  ;;  %v3346_v22 = vor.u32 %v4494_v12, %v3345_v11 }
 0x113   : > { %v4649_v20 = vld [vmem:[%s5267_s2 + $0x654] sm:$0xf]  ;;  %v3726_v29 = vor.u32 %v4585_v18, %v3723_v19  ;;  %v4558_v15 = vld [vmem:[%s5267_s2 + $0x374] sm:$0xf0] }
 0x114   : > { %2215 = vmatpush.bf16.msrb.mxu3 %v4110_v41  ;;  %2190 = vmatpush.bf16.msrb.mxu1 %v3566_v48  ;;  %v3979_v21 = vld [vmem:[%s5267_s2 + $0x670] sm:$0xf0]  ;;  %v1962_v41 = vpop.f32.mrf.mxu3  ;;  %v4638_v48 = vld [vmem:[%s5267_s2 + $0x5f4] sm:$0xf0]  ;;  %v1938_v54 = vpop.f32.mrf.mxu1 }
 0x115   : > { %v4449_v24 = vld [vmem:[%s5267_s2 + $0x14] sm:$0xf]  ;;  %v3982_v36 = vor.u32 %v4649_v20, %v3979_v21  ;;  %v1925_v0 = vpop.f32.mrf.mxu0  ;;  %v3857_v18 = vld [vmem:[%s5267_s2 + $0x558] sm:$0xf] }
 0x116   : > { %2203 = vmatpush.bf16.msrb.mxu2 %v3822_v49  ;;  %2178 = vmatpush.bf16.msrb.mxu0 %v3278_v59  ;;  %v3179_v25 = vld [vmem:[%s5267_s2 + $0x30] sm:$0xf0]  ;;  %v1963_v49 = vadd.f32 %v1962_v41, %v1950_v40  ;;  %v3666_v59 = vor.u32 %v4574_v46, %v3665_v43  ;;  %v1951_v6 = vpop.f32.mrf.mxu2  ;;  %v4622_v19 = vld [vmem:[%s5267_s2 + $0x574] sm:$0xf0] }
 0x117   : > { %v4513_v26 = vld [vmem:[%s5267_s2 + $0x214] sm:$0xf]  ;;  %v3182_v45 = vor.u32 %v4449_v24, %v3179_v25  ;;  %v4113_v20 = vld [vmem:[%s5267_s2 + $0x758] sm:$0xf]  ;;  %v3858_v24 = vor.u32 %v4622_v19, %v3857_v18 }
 0x118   : > { %2216 = vmatpush.bf16.msrb.mxu3 %v4078_v53  ;;  %2191 = vmatpush.bf16.msrb.mxu1 %v3534_v60  ;;  %v3435_v30 = vld [vmem:[%s5267_s2 + $0x230] sm:$0xf0]  ;;  %v4702_v53 = vld [vmem:[%s5267_s2 + $0x7f4] sm:$0xf0]  ;;  %v3922_v60 = vor.u32 %v4638_v48, %v3921_v47 }
 0x119   : > { %v4577_v33 = vld [vmem:[%s5267_s2 + $0x414] sm:$0xf]  ;;  %v3438_v50 = vor.u32 %v4513_v26, %v3435_v30  ;;  %v4686_v21 = vld [vmem:[%s5267_s2 + $0x774] sm:$0xf0] }
 0x11a   : > { %2204 = vmatpush.bf16.msrb.mxu2 %v3790_v61  ;;  %2179 = vmatpush.bf16.msrb.mxu0 %v3246_v7  ;;  %v3691_v34 = vld [vmem:[%s5267_s2 + $0x430] sm:$0xf0]  ;;  %v4502_v61 = vld [vmem:[%s5267_s2 + $0x1b4] sm:$0xf0] }
 0x11b   : > { %v4641_v37 = vld [vmem:[%s5267_s2 + $0x614] sm:$0xf]  ;;  %v3694_v51 = vor.u32 %v4577_v33, %v3691_v34  ;;  %v3378_v7 = vor.u32 %v4502_v61, %v3377_v57  ;;  %v3313_v25 = vld [vmem:[%s5267_s2 + $0x118] sm:$0xf] }
 0x11c   : > { %2217 = vmatpush.bf16.msrb.mxu3 %v4046_v1  ;;  %2192 = vmatpush.bf16.msrb.mxu1 %v3502_v8  ;;  %v3947_v38 = vld [vmem:[%s5267_s2 + $0x630] sm:$0xf0]  ;;  %v4178_v1 = vor.u32 %v4702_v53, %v4177_v52  ;;  %v1964_v8 = vpop.f32.mrf.mxu3  ;;  %v4486_v26 = vld [vmem:[%s5267_s2 + $0x134] sm:$0xf0] }
 0x11d   : > { %v354_v44 = vld [vmem:[#allocation2 + $0x30] sm:$0xff]  ;;  %v3950_v55 = vor.u32 %v4641_v37, %v3947_v38  ;;  %v3569_v27 = vld [vmem:[%s5267_s2 + $0x318] sm:$0xf] }
 0x11e   : > { %2205 = vmatpush.bf16.msrb.mxu2 %v3758_v9  ;;  %2180 = vmatpush.bf16.msrb.mxu0 %v3214_v23  ;;  %v2330_v58 = vadd.f32 %v1963_v49, %v354_v44  ;;  %v3634_v9 = vor.u32 %v4566_v63, %v3633_v62  ;;  %v3602_v23 = vor.u32 %v4558_v15, %v3601_v13  ;;  %v3825_v30 = vld [vmem:[%s5267_s2 + $0x518] sm:$0xf] }
 0x11f   : > { %v4614_v33 = vld [vmem:[%s5267_s2 + $0x534] sm:$0xf0] }
 0x120   : > { %2218 = vmatpush.bf16.msrb.mxu3 %v4014_v14  ;;  %2193 = vmatpush.bf16.msrb.mxu1 %v3470_v28  ;;  %2338 = vst [vmem:[#allocation2 + $0x30] sm:$0xff] %v2330_v58  ;;  %v4146_v14 = vor.u32 %v4694_v5, %v4145_v4  ;;  %v4114_v28 = vor.u32 %v4686_v21, %v4113_v20  ;;  %v4081_v34 = vld [vmem:[%s5267_s2 + $0x718] sm:$0xf] }
 0x121   : > { %v4678_v35 = vld [vmem:[%s5267_s2 + $0x734] sm:$0xf0]  ;;  %v3826_v39 = vor.u32 %v4614_v33, %v3825_v30 }
 0x122   : > { %2206 = vmatpush.bf16.msrb.mxu2 %v3726_v29  ;;  %2181 = vmatpush.bf16.msrb.mxu0 %v3182_v45  ;;  %v4550_v29 = vld [vmem:[%s5267_s2 + $0x334] sm:$0xf0]  ;;  %v1975_v37 = vpop.f32.mrf.mxu0  ;;  %v4082_v44 = vor.u32 %v4678_v35, %v4081_v34 }
 0x123   : > { %v3570_v38 = vor.u32 %v4550_v29, %v3569_v27  ;;  %v3281_v40 = vld [vmem:[%s5267_s2 + $0xd8] sm:$0xf] }
 0x124   : > { %2219 = vmatpush.bf16.msrb.mxu3 %v3982_v36  ;;  %2194 = vmatpush.bf16.msrb.mxu1 %v3438_v50  ;;  %v3314_v36 = vor.u32 %v4486_v26, %v3313_v25  ;;  %v4478_v41 = vld [vmem:[%s5267_s2 + $0xf4] sm:$0xf0]  ;;  %v1988_v43 = vpop.f32.mrf.mxu1 }
 0x125   : > { %2182 = vmatmul.bf16.vlgmr.msrb.gmra.mxu0 %v5391_v31  ;;  %v4542_v45 = vld [vmem:[%s5267_s2 + $0x2f4] sm:$0xf0]  ;;  %v1989_v48 = vadd.f32 %v1988_v43, %v1975_v37  ;;  %v4506_v37 = vld [vmem:[%s5267_s2 + $0x1dc] sm:$0xf] }
 0x126   : > { %2207 = vmatpush.bf16.msrb.mxu2 %v3694_v51  ;;  %2226 = vmatpush.bf16.msra.mxu0 %v3410_v56  ;;  %v3793_v46 = vld [vmem:[%s5267_s2 + $0x4d8] sm:$0xf]  ;;  %v3282_v51 = vor.u32 %v4478_v41, %v3281_v40  ;;  %v3538_v52 = vor.u32 %v4542_v45, %v3537_v42  ;;  %v3667_v41 = vld [vmem:[%s5267_s2 + $0x3f8] sm:$0xf0] }
 0x127   : > { %2195 = vmatmul.bf16.vlgmr.msrb.gmra.mxu1 %v5393_v32  ;;  %v4606_v47 = vld [vmem:[%s5267_s2 + $0x4f4] sm:$0xf0]  ;;  %v4634_v42 = vld [vmem:[%s5267_s2 + $0x5dc] sm:$0xf] }
 0x128   : > { %2220 = vmatpush.bf16.msrb.mxu3 %v3950_v55  ;;  %2239 = vmatpush.bf16.msra.mxu1 %v3666_v59  ;;  %v4049_v49 = vld [vmem:[%s5267_s2 + $0x6d8] sm:$0xf]  ;;  %v3794_v53 = vor.u32 %v4606_v47, %v3793_v46  ;;  %v3923_v43 = vld [vmem:[%s5267_s2 + $0x5f8] sm:$0xf0] }
 0x129   : > { %2208 = vmatmul.bf16.vlgmr.msrb.gmra.mxu2 %v5379_v16  ;;  %v4670_v50 = vld [vmem:[%s5267_s2 + $0x6f4] sm:$0xf0]  ;;  %v4698_v46 = vld [vmem:[%s5267_s2 + $0x7dc] sm:$0xf] }
 0x12a   : > { %2252 = vmatpush.bf16.msra.mxu2 %v3922_v60  ;;  %2227 = vmatpush.bf16.msra.mxu0 %v3378_v7  ;;  %v3249_v54 = vld [vmem:[%s5267_s2 + $0x98] sm:$0xf]  ;;  %v4050_v58 = vor.u32 %v4670_v50, %v4049_v49  ;;  %v1977_v5 = vpop.f32.mrf.mxu0  ;;  %v4179_v47 = vld [vmem:[%s5267_s2 + $0x7f8] sm:$0xf0] }
 0x12b   : > { %2221 = vmatmul.bf16.vlgmr.msrb.gmra.mxu3 %v5381_v17  ;;  %v4470_v55 = vld [vmem:[%s5267_s2 + $0xb4] sm:$0xf0]  ;;  %v4618_v5 = vld [vmem:[%s5267_s2 + $0x55c] sm:$0xf] }
 0x12c   : > { %2265 = vmatpush.bf16.msra.mxu3 %v4178_v1  ;;  %2240 = vmatpush.bf16.msra.mxu1 %v3634_v9  ;;  %v3505_v56 = vld [vmem:[%s5267_s2 + $0x298] sm:$0xf]  ;;  %v2001_v57 = vpop.f32.mrf.mxu2  ;;  %v3250_v3 = vor.u32 %v4470_v55, %v3249_v54  ;;  %v1990_v11 = vpop.f32.mrf.mxu1  ;;  %v4562_v54 = vld [vmem:[%s5267_s2 + $0x39c] sm:$0xf]  ;;  %v4182_v55 = vor.u32 %v4698_v46, %v4179_v47 }
 0x12d   : > { %v4534_v59 = vld [vmem:[%s5267_s2 + $0x2b4] sm:$0xf0]  ;;  %v2002_v62 = vadd.f32 %v2001_v57, %v1989_v48  ;;  %v4626_v57 = vld [vmem:[%s5267_s2 + $0x59c] sm:$0xf] }
 0x12e   : > { %2253 = vmatpush.bf16.msra.mxu2 %v3890_v10  ;;  %2228 = vmatpush.bf16.msra.mxu0 %v3346_v22  ;;  %v3761_v60 = vld [vmem:[%s5267_s2 + $0x498] sm:$0xf]  ;;  %v2014_v63 = vpop.f32.mrf.mxu3  ;;  %v3506_v6 = vor.u32 %v4534_v59, %v3505_v56  ;;  %v3635_v56 = vld [vmem:[%s5267_s2 + $0x3b8] sm:$0xf0] }
 0x12f   : > { %v4598_v61 = vld [vmem:[%s5267_s2 + $0x4b4] sm:$0xf0]  ;;  %v2015_v4 = vadd.f32 %v2014_v63, %v2002_v62  ;;  %v4690_v59 = vld [vmem:[%s5267_s2 + $0x79c] sm:$0xf]  ;;  %v3638_v62 = vor.u32 %v4562_v54, %v3635_v56 }
 0x130   : > { %2266 = vmatpush.bf16.msra.mxu3 %v4146_v14  ;;  %2241 = vmatpush.bf16.msra.mxu1 %v3602_v23  ;;  %v4017_v0 = vld [vmem:[%s5267_s2 + $0x698] sm:$0xf]  ;;  %v3762_v7 = vor.u32 %v4598_v61, %v3761_v60  ;;  %v4147_v60 = vld [vmem:[%s5267_s2 + $0x7b8] sm:$0xf0] }
 0x131   : > { %v4662_v1 = vld [vmem:[%s5267_s2 + $0x6b4] sm:$0xf0]  ;;  %v2331_v18 = vadd.f32 %v2015_v4, %v355_v2  ;;  %v4554_v2 = vld [vmem:[%s5267_s2 + $0x35c] sm:$0xf] }
 0x132   : > { %2254 = vmatpush.bf16.msra.mxu2 %v3858_v24  ;;  %2229 = vmatpush.bf16.msra.mxu0 %v3314_v36  ;;  %v3217_v8 = vld [vmem:[%s5267_s2 + $0x58] sm:$0xf]  ;;  %v4018_v12 = vor.u32 %v4662_v1, %v4017_v0  ;;  %v4490_v0 = vld [vmem:[%s5267_s2 + $0x15c] sm:$0xf] }
 0x133   : > { %v4462_v9 = vld [vmem:[%s5267_s2 + $0x74] sm:$0xf0]  ;;  %2339 = vst [vmem:[#allocation2] sm:$0xff] %v2331_v18  ;;  %v3347_v1 = vld [vmem:[%s5267_s2 + $0x178] sm:$0xf0] }
 0x134   : > { %2267 = vmatpush.bf16.msra.mxu3 %v4114_v28  ;;  %2242 = vmatpush.bf16.msra.mxu1 %v3570_v38  ;;  %v3473_v10 = vld [vmem:[%s5267_s2 + $0x258] sm:$0xf]  ;;  %v3218_v21 = vor.u32 %v4462_v9, %v3217_v8  ;;  %v2003_v29 = vpop.f32.mrf.mxu2  ;;  %v3411_v38 = vld [vmem:[%s5267_s2 + $0x1f8] sm:$0xf0]  ;;  %v3350_v9 = vor.u32 %v4490_v0, %v3347_v1 }
 0x135   : > { %v4526_v13 = vld [vmem:[%s5267_s2 + $0x274] sm:$0xf0]  ;;  %v3414_v49 = vor.u32 %v4506_v37, %v3411_v38  ;;  %v3603_v4 = vld [vmem:[%s5267_s2 + $0x378] sm:$0xf0] }
 0x136   : > { %2255 = vmatpush.bf16.msra.mxu2 %v3826_v39  ;;  %2230 = vmatpush.bf16.msra.mxu0 %v3282_v51  ;;  %v3729_v14 = vld [vmem:[%s5267_s2 + $0x458] sm:$0xf]  ;;  %v3474_v24 = vor.u32 %v4526_v13, %v3473_v10  ;;  %v2016_v36 = vpop.f32.mrf.mxu3  ;;  %v4570_v39 = vld [vmem:[%s5267_s2 + $0x3dc] sm:$0xf]  ;;  %v3926_v51 = vor.u32 %v4634_v42, %v3923_v43  ;;  %v3606_v10 = vor.u32 %v4554_v2, %v3603_v4 }
 0x137   : > { %v4590_v15 = vld [vmem:[%s5267_s2 + $0x474] sm:$0xf0]  ;;  %v3670_v50 = vor.u32 %v4570_v39, %v3667_v41  ;;  %v4115_v8 = vld [vmem:[%s5267_s2 + $0x778] sm:$0xf0] }
 0x138   : > { %2268 = vmatpush.bf16.msra.mxu3 %v4082_v44  ;;  %2243 = vmatpush.bf16.msra.mxu1 %v3538_v52  ;;  %v3985_v19 = vld [vmem:[%s5267_s2 + $0x658] sm:$0xf]  ;;  %v3730_v25 = vor.u32 %v4590_v15, %v3729_v14  ;;  %v4498_v52 = vld [vmem:[%s5267_s2 + $0x19c] sm:$0xf] }
 0x139   : > { %v4654_v20 = vld [vmem:[%s5267_s2 + $0x674] sm:$0xf0]  ;;  %v3315_v13 = vld [vmem:[%s5267_s2 + $0x138] sm:$0xf0] }
 0x13a   : > { %2256 = vmatpush.bf16.msra.mxu2 %v3794_v53  ;;  %2231 = vmatpush.bf16.msra.mxu0 %v3250_v3  ;;  %v3185_v22 = vld [vmem:[%s5267_s2 + $0x18] sm:$0xf]  ;;  %v3986_v30 = vor.u32 %v4654_v20, %v3985_v19  ;;  %v3379_v53 = vld [vmem:[%s5267_s2 + $0x1b8] sm:$0xf0]  ;;  %v4150_v3 = vor.u32 %v4690_v59, %v4147_v60 }
 0x13b   : > { %v4454_v23 = vld [vmem:[%s5267_s2 + $0x34] sm:$0xf0]  ;;  %v3382_v61 = vor.u32 %v4498_v52, %v3379_v53  ;;  %v4546_v14 = vld [vmem:[%s5267_s2 + $0x31c] sm:$0xf] }
 0x13c   : > { %2269 = vmatpush.bf16.msra.mxu3 %v4050_v58  ;;  %2244 = vmatpush.bf16.msra.mxu1 %v3506_v6  ;;  %v3441_v26 = vld [vmem:[%s5267_s2 + $0x218] sm:$0xf]  ;;  %v3186_v40 = vor.u32 %v4454_v23, %v3185_v22  ;;  %v3891_v58 = vld [vmem:[%s5267_s2 + $0x5b8] sm:$0xf0] }
 0x13d   : > { %v4518_v27 = vld [vmem:[%s5267_s2 + $0x234] sm:$0xf0]  ;;  %v3894_v63 = vor.u32 %v4626_v57, %v3891_v58  ;;  %v3859_v6 = vld [vmem:[%s5267_s2 + $0x578] sm:$0xf0] }
 0x13e   : > { %2257 = vmatpush.bf16.msra.mxu2 %v3762_v7  ;;  %v3697_v28 = vld [vmem:[%s5267_s2 + $0x418] sm:$0xf]  ;;  %2232 = vmatpush.bf16.msra.mxu0 %v3218_v21  ;;  %v3442_v44 = vor.u32 %v4518_v27, %v3441_v26  ;;  %v4682_v7 = vld [vmem:[%s5267_s2 + $0x75c] sm:$0xf]  ;;  %v3862_v11 = vor.u32 %v4618_v5, %v3859_v6 }
 0x13f   : > { %v4582_v33 = vld [vmem:[%s5267_s2 + $0x434] sm:$0xf0]  ;;  %v4118_v15 = vor.u32 %v4682_v7, %v4115_v8  ;;  %v3571_v18 = vld [vmem:[%s5267_s2 + $0x338] sm:$0xf0] }
 0x140   : > { %2270 = vmatpush.bf16.msra.mxu3 %v4018_v12  ;;  %v3953_v34 = vld [vmem:[%s5267_s2 + $0x618] sm:$0xf]  ;;  %2245 = vmatpush.bf16.msra.mxu1 %v3474_v24  ;;  %v3698_v45 = vor.u32 %v4582_v33, %v3697_v28  ;;  %v4482_v12 = vld [vmem:[%s5267_s2 + $0x11c] sm:$0xf] }
 0x141   : > { %v4646_v35 = vld [vmem:[%s5267_s2 + $0x634] sm:$0xf0]  ;;  %v4610_v19 = vld [vmem:[%s5267_s2 + $0x51c] sm:$0xf]  ;;  %v3318_v23 = vor.u32 %v4482_v12, %v3315_v13 }
 0x142   : > { %2258 = vmatpush.bf16.msra.mxu2 %v3730_v25  ;;  %v3954_v48 = vor.u32 %v4646_v35, %v3953_v34  ;;  %2233 = vmatpush.bf16.msra.mxu0 %v3186_v40  ;;  %v3827_v20 = vld [vmem:[%s5267_s2 + $0x538] sm:$0xf0]  ;;  %v2027_v24 = vpop.f32.mrf.mxu0  ;;  %v3574_v25 = vor.u32 %v4546_v14, %v3571_v18 }
 0x143   : > { %v4674_v21 = vld [vmem:[%s5267_s2 + $0x71c] sm:$0xf]  ;;  %v3830_v26 = vor.u32 %v4610_v19, %v3827_v20 }
 0x144   : > { %2271 = vmatpush.bf16.msra.mxu3 %v3986_v30  ;;  %2246 = vmatpush.bf16.msra.mxu1 %v3442_v44  ;;  %v4083_v22 = vld [vmem:[%s5267_s2 + $0x738] sm:$0xf0]  ;;  %v2040_v30 = vpop.f32.mrf.mxu1 }
 0x145   : > { %2234 = vmatmul.bf16.vlgmr.msra.gmra.mxu0 %v5391_v31  ;;  %v4474_v27 = vld [vmem:[%s5267_s2 + $0xdc] sm:$0xf]  ;;  %v4086_v33 = vor.u32 %v4674_v21, %v4083_v22  ;;  %v2041_v37 = vadd.f32 %v2040_v30, %v2027_v24 }
 0x146   : > { %2259 = vmatpush.bf16.msra.mxu2 %v3698_v45  ;;  %2278 = vmatpush.bf16.msrb.mxu0 %v3414_v49  ;;  %v3283_v28 = vld [vmem:[%s5267_s2 + $0xf8] sm:$0xf0] }
 0x147   : > { %2247 = vmatmul.bf16.vlgmr.msra.gmra.mxu1 %v5393_v32  ;;  %v4538_v29 = vld [vmem:[%s5267_s2 + $0x2dc] sm:$0xf]  ;;  %v3286_v40 = vor.u32 %v4474_v27, %v3283_v28 }
 0x148   : > { %2272 = vmatpush.bf16.msra.mxu3 %v3954_v48  ;;  %2291 = vmatpush.bf16.msrb.mxu1 %v3670_v50  ;;  %v3539_v34 = vld [vmem:[%s5267_s2 + $0x2f8] sm:$0xf0] }
 0x149   : > { %2260 = vmatmul.bf16.vlgmr.msra.gmra.mxu2 %v5379_v16  ;;  %v4602_v35 = vld [vmem:[%s5267_s2 + $0x4dc] sm:$0xf]  ;;  %v3542_v41 = vor.u32 %v4538_v29, %v3539_v34 }
 0x14a   : > { %2304 = vmatpush.bf16.msrb.mxu2 %v3926_v51  ;;  %2279 = vmatpush.bf16.msrb.mxu0 %v3382_v61  ;;  %v3795_v36 = vld [vmem:[%s5267_s2 + $0x4f8] sm:$0xf0]  ;;  %v2029_v58 = vpop.f32.mrf.mxu0 }
 0x14b   : > { %2273 = vmatmul.bf16.vlgmr.msra.gmra.mxu3 %v5381_v17  ;;  %v4666_v38 = vld [vmem:[%s5267_s2 + $0x6dc] sm:$0xf]  ;;  %v3798_v42 = vor.u32 %v4602_v35, %v3795_v36  ;;  %v357_v36 = vld [vmem:[#allocation2 + $0x10] sm:$0xff]  ;;  %v359_v58 = vld [vmem:[#allocation2 + $0x20] sm:$0xff] }
 0x14c   : > { %2317 = vmatpush.bf16.msrb.mxu3 %v4182_v55  ;;  %2292 = vmatpush.bf16.msrb.mxu1 %v3638_v62  ;;  %v4051_v39 = vld [vmem:[%s5267_s2 + $0x6f8] sm:$0xf0]  ;;  %v2053_v46 = vpop.f32.mrf.mxu2  ;;  %v2042_v0 = vpop.f32.mrf.mxu1 }
 0x14d   : > { %v4466_v43 = vld [vmem:[%s5267_s2 + $0x9c] sm:$0xf]  ;;  %v4054_v47 = vor.u32 %v4666_v38, %v4051_v39  ;;  %v2054_v51 = vadd.f32 %v2053_v46, %v2041_v37 }
 0x14e   : > { %2305 = vmatpush.bf16.msrb.mxu2 %v3894_v63  ;;  %2280 = vmatpush.bf16.msrb.mxu0 %v3350_v9  ;;  %v3251_v44 = vld [vmem:[%s5267_s2 + $0xb8] sm:$0xf0]  ;;  %v2066_v52 = vpop.f32.mrf.mxu3 }
 0x14f   : > { %v4530_v45 = vld [vmem:[%s5267_s2 + $0x29c] sm:$0xf]  ;;  %v3254_v56 = vor.u32 %v4466_v43, %v3251_v44  ;;  %v2067_v57 = vadd.f32 %v2066_v52, %v2054_v51 }
 0x150   : > { %2318 = vmatpush.bf16.msrb.mxu3 %v4150_v3  ;;  %2293 = vmatpush.bf16.msrb.mxu1 %v3606_v10  ;;  %v3507_v48 = vld [vmem:[%s5267_s2 + $0x2b8] sm:$0xf0] }
 0x151   : > { %v4594_v49 = vld [vmem:[%s5267_s2 + $0x49c] sm:$0xf]  ;;  %v3510_v59 = vor.u32 %v4530_v45, %v3507_v48  ;;  %v358_v45 = vld [vmem:[#allocation2 + $0x8] sm:$0xff] }
 0x152   : > { %2306 = vmatpush.bf16.msrb.mxu2 %v3862_v11  ;;  %2281 = vmatpush.bf16.msrb.mxu0 %v3318_v23  ;;  %v3763_v50 = vld [vmem:[%s5267_s2 + $0x4b8] sm:$0xf0] }
 0x153   : > { %v4658_v53 = vld [vmem:[%s5267_s2 + $0x69c] sm:$0xf]  ;;  %v3766_v60 = vor.u32 %v4594_v49, %v3763_v50 }
 0x154   : > { %2319 = vmatpush.bf16.msrb.mxu3 %v4118_v15  ;;  %2294 = vmatpush.bf16.msrb.mxu1 %v3574_v25  ;;  %v4019_v54 = vld [vmem:[%s5267_s2 + $0x6b8] sm:$0xf0]  ;;  %v2055_v14 = vpop.f32.mrf.mxu2 }
 0x155   : > { %v356_v55 = vld [vmem:[#allocation2 + $0x18] sm:$0xff]  ;;  %v4022_v1 = vor.u32 %v4658_v53, %v4019_v54 }
 0x156   : > { %2307 = vmatpush.bf16.msrb.mxu2 %v3830_v26  ;;  %2282 = vmatpush.bf16.msrb.mxu0 %v3286_v40  ;;  %v4458_v61 = vld [vmem:[%s5267_s2 + $0x5c] sm:$0xf]  ;;  %v2332_v5 = vadd.f32 %v2067_v57, %v356_v55  ;;  %v2068_v21 = vpop.f32.mrf.mxu3 }
 0x157   : > { %v3219_v62 = vld [vmem:[%s5267_s2 + $0x78] sm:$0xf0] }
 0x158   : > { %2320 = vmatpush.bf16.msrb.mxu3 %v4086_v33  ;;  %2295 = vmatpush.bf16.msrb.mxu1 %v3542_v41  ;;  %v4522_v63 = vld [vmem:[%s5267_s2 + $0x25c] sm:$0xf]  ;;  %v3222_v8 = vor.u32 %v4458_v61, %v3219_v62  ;;  %2340 = vst [vmem:[#allocation2 + $0x18] sm:$0xff] %v2332_v5 }
 0x159   : > { %v3475_v2 = vld [vmem:[%s5267_s2 + $0x278] sm:$0xf0] }
 0x15a   : > { %2308 = vmatpush.bf16.msrb.mxu2 %v3798_v42  ;;  %v4586_v3 = vld [vmem:[%s5267_s2 + $0x45c] sm:$0xf]  ;;  %2283 = vmatpush.bf16.msrb.mxu0 %v3254_v56  ;;  %v3478_v9 = vor.u32 %v4522_v63, %v3475_v2 }
 0x15b   : > { %v3731_v4 = vld [vmem:[%s5267_s2 + $0x478] sm:$0xf0] }
 0x15c   : > { %2321 = vmatpush.bf16.msrb.mxu3 %v4054_v47  ;;  %v4650_v6 = vld [vmem:[%s5267_s2 + $0x65c] sm:$0xf]  ;;  %2296 = vmatpush.bf16.msrb.mxu1 %v3510_v59  ;;  %v3734_v10 = vor.u32 %v4586_v3, %v3731_v4 }
 0x15d   : > { %v3987_v7 = vld [vmem:[%s5267_s2 + $0x678] sm:$0xf0] }
 0x15e   : > { %2309 = vmatpush.bf16.msrb.mxu2 %v3766_v60  ;;  %v4450_v11 = vld [vmem:[%s5267_s2 + $0x1c] sm:$0xf]  ;;  %v3990_v15 = vor.u32 %v4650_v6, %v3987_v7  ;;  %2284 = vmatpush.bf16.msrb.mxu0 %v3222_v8  ;;  %v360_v7 = vld [vmem:[#allocation2 + $0x28] sm:$0xff] }
 0x15f   : > { %v3187_v12 = vld [vmem:[%s5267_s2 + $0x38] sm:$0xf0] }
 0x160   : > { %v4514_v13 = vld [vmem:[%s5267_s2 + $0x21c] sm:$0xf]  ;;  %2322 = vmatpush.bf16.msrb.mxu3 %v4022_v1  ;;  %v3190_v24 = vor.u32 %v4450_v11, %v3187_v12  ;;  %2297 = vmatpush.bf16.msrb.mxu1 %v3478_v9 }
 0x161   : > { %v3443_v18 = vld [vmem:[%s5267_s2 + $0x238] sm:$0xf0] }
 0x162   : > { %v4578_v19 = vld [vmem:[%s5267_s2 + $0x41c] sm:$0xf]  ;;  %2310 = vmatpush.bf16.msrb.mxu2 %v3734_v10  ;;  %v3446_v25 = vor.u32 %v4514_v13, %v3443_v18  ;;  %2285 = vmatpush.bf16.msrb.mxu0 %v3190_v24  ;;  %v2079_v28 = vpop.f32.mrf.mxu0 }
 0x163   : > { %v3699_v20 = vld [vmem:[%s5267_s2 + $0x438] sm:$0xf0] }
 0x164   : > { %v4642_v22 = vld [vmem:[%s5267_s2 + $0x61c] sm:$0xf]  ;;  %v3702_v26 = vor.u32 %v4578_v19, %v3699_v20  ;;  %2323 = vmatpush.bf16.msrb.mxu3 %v3990_v15  ;;  %2298 = vmatpush.bf16.msrb.mxu1 %v3446_v25  ;;  %v2092_v29 = vpop.f32.mrf.mxu1 }
 0x165   : > { %v3955_v23 = vld [vmem:[%s5267_s2 + $0x638] sm:$0xf0]  ;;  %2286 = vmatmul.bf16.vlgmr.msrb.gmra.mxu0 %v5391_v31  ;;  %v2093_v30 = vadd.f32 %v2092_v29, %v2079_v28 }
 0x166   : > { %v3958_v27 = vor.u32 %v4642_v22, %v3955_v23  ;;  %2311 = vmatpush.bf16.msrb.mxu2 %v3702_v26  ;;  %v361_v23 = vld [vmem:[#allocation2 + $0x38] sm:$0xff] }
 0x167   : > { %2299 = vmatmul.bf16.vlgmr.msrb.gmra.mxu1 %v5393_v32 }
 0x168   : > { %2324 = vmatpush.bf16.msrb.mxu3 %v3958_v27 }
 0x169   : > { %2312 = vmatmul.bf16.vlgmr.msrb.gmra.mxu2 %v5379_v16 }
 0x16a   : > { %v2081_v38 = vpop.f32.mrf.mxu0 }
 0x16b   : > { %2325 = vmatmul.bf16.vlgmr.msrb.gmra.mxu3 %v5381_v17 }
 0x16c   : > { %v2105_v33 = vpop.f32.mrf.mxu2  ;;  %v2094_v39 = vpop.f32.mrf.mxu1 }
 0x16d   : > { %v2106_v34 = vadd.f32 %v2105_v33, %v2093_v30 }
 0x16e   : > { %v2118_v35 = vpop.f32.mrf.mxu3 }
 0x16f   : > { %v2119_v37 = vadd.f32 %v2118_v35, %v2106_v34 }
 0x171   : > { %v2333_v40 = vadd.f32 %v2119_v37, %v357_v36 }
 0x173   : > { %2341 = vst [vmem:[#allocation2 + $0x10] sm:$0xff] %v2333_v40 }
 0x174   : > { %v2107_v41 = vpop.f32.mrf.mxu2 }
 0x176   : > { %v2120_v31 = vpop.f32.mrf.mxu3 }
 0x182   : > { %v2131_v42 = vpop.f32.mrf.mxu0 }
 0x184   : > { %v2144_v32 = vpop.f32.mrf.mxu1 }
 0x185   : > { %v2145_v43 = vadd.f32 %v2144_v32, %v2131_v42 }
 0x18a   : > { %v2133_v47 = vpop.f32.mrf.mxu0 }
 0x18c   : > { %v2157_v16 = vpop.f32.mrf.mxu2  ;;  %v2146_v48 = vpop.f32.mrf.mxu1 }
 0x18d   : > { %v2158_v44 = vadd.f32 %v2157_v16, %v2145_v43 }
 0x18e   : > { %v2170_v17 = vpop.f32.mrf.mxu3 }
 0x18f   : > { %v2171_v46 = vadd.f32 %v2170_v17, %v2158_v44 }
 0x191   : > { %v2334_v49 = vadd.f32 %v2171_v46, %v358_v45 }
 0x193   : > { %2342 = vst [vmem:[#allocation2 + $0x8] sm:$0xff] %v2334_v49 }
 0x194   : > { %v2159_v50 = vpop.f32.mrf.mxu2 }
 0x196   : > { %v2172_v51 = vpop.f32.mrf.mxu3 }
 0x1a2   : > { %v2183_v52 = vpop.f32.mrf.mxu0 }
 0x1a4   : > { %v2196_v53 = vpop.f32.mrf.mxu1 }
 0x1a5   : > { %v2197_v54 = vadd.f32 %v2196_v53, %v2183_v52 }
 0x1aa   : > { %v2185_v60 = vpop.f32.mrf.mxu0 }
 0x1ac   : > { %v2209_v55 = vpop.f32.mrf.mxu2  ;;  %v2198_v61 = vpop.f32.mrf.mxu1 }
 0x1ad   : > { %v2210_v56 = vadd.f32 %v2209_v55, %v2197_v54 }
 0x1ae   : > { %v2222_v57 = vpop.f32.mrf.mxu3 }
 0x1af   : > { %v2223_v59 = vadd.f32 %v2222_v57, %v2210_v56 }
 0x1b1   : > { %v2335_v62 = vadd.f32 %v2223_v59, %v359_v58 }
 0x1b3   : > { %2343 = vst [vmem:[#allocation2 + $0x20] sm:$0xff] %v2335_v62 }
 0x1b4   : > { %v2211_v63 = vpop.f32.mrf.mxu2 }
 0x1b6   : > { %v2224_v0 = vpop.f32.mrf.mxu3 }
 0x1c2   : > { %v2235_v1 = vpop.f32.mrf.mxu0 }
 0x1c4   : > { %v2248_v2 = vpop.f32.mrf.mxu1 }
 0x1c5   : > { %v2249_v3 = vadd.f32 %v2248_v2, %v2235_v1 }
 0x1ca   : > { %v2237_v9 = vpop.f32.mrf.mxu0 }
 0x1cc   : > { %v2261_v4 = vpop.f32.mrf.mxu2  ;;  %v2250_v10 = vpop.f32.mrf.mxu1 }
 0x1cd   : > { %v2262_v5 = vadd.f32 %v2261_v4, %v2249_v3 }
 0x1ce   : > { %v2274_v6 = vpop.f32.mrf.mxu3 }
 0x1cf   : > { %v2275_v8 = vadd.f32 %v2274_v6, %v2262_v5 }
 0x1d1   : > { %v2336_v11 = vadd.f32 %v2275_v8, %v360_v7 }
 0x1d3   : > { %2344 = vst [vmem:[#allocation2 + $0x28] sm:$0xff] %v2336_v11 }
 0x1d4   : > { %v2263_v12 = vpop.f32.mrf.mxu2 }
 0x1d6   : > { %v2276_v13 = vpop.f32.mrf.mxu3 }
 0x1e2   : > { %v2287_v14 = vpop.f32.mrf.mxu0 }
 0x1e4   : > { %v2300_v15 = vpop.f32.mrf.mxu1 }
 0x1e5   : > { %v2301_v18 = vadd.f32 %v2300_v15, %v2287_v14 }
 0x1ea   : > { %v2289_v22 = vpop.f32.mrf.mxu0 }
 0x1ec   : > { %v2313_v19 = vpop.f32.mrf.mxu2  ;;  %v2302_v24 = vpop.f32.mrf.mxu1 }
 0x1ed   : > { %v2314_v20 = vadd.f32 %v2313_v19, %v2301_v18 }
 0x1ee   : > { %v2326_v21 = vpop.f32.mrf.mxu3 }
 0x1ef   : > { %v2327_v25 = vadd.f32 %v2326_v21, %v2314_v20 }
 0x1f1   : > { %v2337_v26 = vadd.f32 %v2327_v25, %v361_v23 }
 0x1f2   : > { %2349 = sbr.rel (%p4183_p1) target bundleno = 710 (0x2c6), region = 68 }
 0x1f3   : > { %2345 = vst [vmem:[#allocation2 + $0x38] sm:$0xff] %v2337_v26 }
 0x1f4   : > { %v2315_v27 = vpop.f32.mrf.mxu2 }
 0x1f6   : > { %v2328_v28 = vpop.f32.mrf.mxu3 }
 0x1f7   : > { %v4710_v29 = vld [vmem:[#allocation9 + $0x38] sm:$0xff]  ;;  %v4709_v35 = vld [vmem:[#allocation9 + $0x30] sm:$0xff]  ;;  %v4708_v39 = vld [vmem:[#allocation9 + $0x28] sm:$0xff] }
 0x1f8   : > { %v4718_v30 = vld [vmem:[#allocation9 + $0x78] sm:$0xff]  ;;  %2908 = vmatpush.bf16.msra.mxu0 %v4710_v29  ;;  %v4717_v36 = vld [vmem:[#allocation9 + $0x70] sm:$0xff]  ;;  %v4716_v40 = vld [vmem:[#allocation9 + $0x68] sm:$0xff] }
 0x1f9   : > { %v4726_v33 = vld [vmem:[#allocation9 + $0xb8] sm:$0xff]  ;;  %2921 = vmatpush.bf16.msra.mxu1 %v4718_v30  ;;  %v4725_v37 = vld [vmem:[#allocation9 + $0xb0] sm:$0xff]  ;;  %v4724_v41 = vld [vmem:[#allocation9 + $0xa8] sm:$0xff] }
 0x1fa   : > { %v4734_v34 = vld [vmem:[#allocation9 + $0xf8] sm:$0xff]  ;;  %2934 = vmatpush.bf16.msra.mxu2 %v4726_v33  ;;  %v4733_v38 = vld [vmem:[#allocation9 + $0xf0] sm:$0xff]  ;;  %v4732_v31 = vld [vmem:[#allocation9 + $0xe8] sm:$0xff] }
 0x1fb   : > { %2947 = vmatpush.bf16.msra.mxu3 %v4734_v34  ;;  %v4707_v42 = vld [vmem:[#allocation9 + $0x20] sm:$0xff]  ;;  %v4706_v44 = vld [vmem:[#allocation9 + $0x18] sm:$0xff]  ;;  %v4705_v47 = vld [vmem:[#allocation9 + $0x10] sm:$0xff] }
 0x1fc   : > { %2909 = vmatpush.bf16.msra.mxu0 %v4709_v35  ;;  %v4715_v32 = vld [vmem:[#allocation9 + $0x60] sm:$0xff]  ;;  %v4714_v17 = vld [vmem:[#allocation9 + $0x58] sm:$0xff]  ;;  %v4713_v48 = vld [vmem:[#allocation9 + $0x50] sm:$0xff] }
 0x1fd   : > { %2922 = vmatpush.bf16.msra.mxu1 %v4717_v36  ;;  %v4723_v43 = vld [vmem:[#allocation9 + $0xa0] sm:$0xff]  ;;  %v4722_v45 = vld [vmem:[#allocation9 + $0x98] sm:$0xff]  ;;  %v4721_v49 = vld [vmem:[#allocation9 + $0x90] sm:$0xff] }
 0x1fe   : > { %2935 = vmatpush.bf16.msra.mxu2 %v4725_v37  ;;  %v4731_v16 = vld [vmem:[#allocation9 + $0xe0] sm:$0xff]  ;;  %v4730_v46 = vld [vmem:[#allocation9 + $0xd8] sm:$0xff]  ;;  %v4729_v50 = vld [vmem:[#allocation9 + $0xd0] sm:$0xff] }
 0x1ff   : > { %2948 = vmatpush.bf16.msra.mxu3 %v4733_v38  ;;  %v5837_v51 = vld [vmem:[#allocation8] sm:$0xff]  ;;  %v4704_v52 = vld [vmem:[#allocation9 + $0x8] sm:$0xff]  ;;  %v2352_v58 = vld [vmem:[#allocation2 + $0x18] sm:$0xff] }
 0x200   : > { %2910 = vmatpush.bf16.msra.mxu0 %v4708_v39  ;;  %v4712_v53 = vld [vmem:[#allocation9 + $0x48] sm:$0xff]  ;;  %v2362_v55 = vperm.slane %v5837_v51, 2  ;;  %v2363_v56 = vperm.slane %v5837_v51, 3  ;;  %v2360_v60 = vperm.slane %v5837_v51, 0  ;;  %v2361_v61 = vperm.slane %v5837_v51, 1  ;;  %v2351_v63 = vld [vmem:[#allocation2] sm:$0xff] }
 0x201   : > { %2923 = vmatpush.bf16.msra.mxu1 %v4716_v40  ;;  %v4720_v54 = vld [vmem:[#allocation9 + $0x88] sm:$0xff]  ;;  %v4703_v0 = vld [vmem:[#allocation9] sm:$0xff]  ;;  %v4742_v8 = vld [vmem:[#allocation9 + $0x138] sm:$0xff] }
 0x202   : > { %2936 = vmatpush.bf16.msra.mxu2 %v4724_v41  ;;  %v4728_v57 = vld [vmem:[#allocation9 + $0xc8] sm:$0xff]  ;;  %v4711_v1 = vld [vmem:[#allocation9 + $0x40] sm:$0xff]  ;;  %v2378_v2 = vadd.f32 %v2362_v55, %v2352_v58  ;;  %v2377_v7 = vadd.f32 %v2361_v61, %v2351_v63  ;;  %v4750_v9 = vld [vmem:[#allocation9 + $0x178] sm:$0xff] }
 0x203   : > { %2949 = vmatpush.bf16.msra.mxu3 %v4732_v31  ;;  %v2353_v59 = vld [vmem:[#allocation2 + $0x10] sm:$0xff]  ;;  %v4719_v4 = vld [vmem:[#allocation9 + $0x80] sm:$0xff]  ;;  %v4758_v10 = vld [vmem:[#allocation9 + $0x1b8] sm:$0xff]  ;;  %v2364_v31 = vperm.slane %v5837_v51, 4 }
 0x204   : > { %2911 = vmatpush.bf16.msra.mxu0 %v4707_v42  ;;  %v2350_v62 = vld [vmem:[#allocation2 + $0x30] sm:$0xff]  ;;  %v2379_v3 = vadd.f32 %v2363_v56, %v2353_v59  ;;  %v4727_v5 = vld [vmem:[#allocation9 + $0xc0] sm:$0xff]  ;;  %v4766_v11 = vld [vmem:[#allocation9 + $0x1f8] sm:$0xff]  ;;  %v2386_v12 = vpack.c.bf16 %v2378_v2, %v2378_v2  ;;  %v2385_v15 = vpack.c.bf16 %v2377_v7, %v2377_v7  ;;  %v2365_v42 = vperm.slane %v5837_v51, 5 }
 0x205   : > { %2924 = vmatpush.bf16.msra.mxu1 %v4715_v32  ;;  %v2376_v6 = vadd.f32 %v2360_v60, %v2350_v62  ;;  %v4741_v18 = vld [vmem:[#allocation9 + $0x130] sm:$0xff]  ;;  %v4740_v22 = vld [vmem:[#allocation9 + $0x128] sm:$0xff]  ;;  %v4739_v26 = vld [vmem:[#allocation9 + $0x120] sm:$0xff] }
 0x206   : > { %2937 = vmatpush.bf16.msra.mxu2 %v4723_v43  ;;  %v2387_v13 = vpack.c.bf16 %v2379_v3, %v2379_v3  ;;  %v4749_v19 = vld [vmem:[#allocation9 + $0x170] sm:$0xff]  ;;  %v4748_v23 = vld [vmem:[#allocation9 + $0x168] sm:$0xff]  ;;  %v4747_v27 = vld [vmem:[#allocation9 + $0x160] sm:$0xff] }
 0x207   : > { %2950 = vmatpush.bf16.msra.mxu3 %v4731_v16  ;;  %v2384_v14 = vpack.c.bf16 %v2376_v6, %v2376_v6  ;;  %v4757_v20 = vld [vmem:[#allocation9 + $0x1b0] sm:$0xff]  ;;  %v4756_v24 = vld [vmem:[#allocation9 + $0x1a8] sm:$0xff]  ;;  %v4755_v28 = vld [vmem:[#allocation9 + $0x1a0] sm:$0xff] }
 0x208   : > { %2912 = vmatpush.bf16.msra.mxu0 %v4706_v44  ;;  %v4765_v21 = vld [vmem:[#allocation9 + $0x1f0] sm:$0xff]  ;;  %v4764_v25 = vld [vmem:[#allocation9 + $0x1e8] sm:$0xff]  ;;  %v4763_v29 = vld [vmem:[#allocation9 + $0x1e0] sm:$0xff]  ;;  %v2366_v44 = vperm.slane %v5837_v51, 6 }
 0x209   : > { %2925 = vmatpush.bf16.msra.mxu1 %v4714_v17  ;;  %v4738_v30 = vld [vmem:[#allocation9 + $0x118] sm:$0xff]  ;;  %v4737_v36 = vld [vmem:[#allocation9 + $0x110] sm:$0xff]  ;;  %v4736_v40 = vld [vmem:[#allocation9 + $0x108] sm:$0xff]  ;;  %v2367_v17 = vperm.slane %v5837_v51, 7 }
 0x20a   : > { %2938 = vmatpush.bf16.msra.mxu2 %v4722_v45  ;;  %v4746_v33 = vld [vmem:[#allocation9 + $0x158] sm:$0xff]  ;;  %v4745_v37 = vld [vmem:[#allocation9 + $0x150] sm:$0xff]  ;;  %v4744_v41 = vld [vmem:[#allocation9 + $0x148] sm:$0xff] }
 0x20b   : > { %2951 = vmatpush.bf16.msra.mxu3 %v4730_v46  ;;  %v4754_v34 = vld [vmem:[#allocation9 + $0x198] sm:$0xff]  ;;  %v4753_v38 = vld [vmem:[#allocation9 + $0x190] sm:$0xff]  ;;  %v4752_v32 = vld [vmem:[#allocation9 + $0x188] sm:$0xff] }
 0x20c   : > { %2913 = vmatpush.bf16.msra.mxu0 %v4705_v47  ;;  %v4762_v35 = vld [vmem:[#allocation9 + $0x1d8] sm:$0xff]  ;;  %v4761_v39 = vld [vmem:[#allocation9 + $0x1d0] sm:$0xff]  ;;  %v2354_v43 = vld [vmem:[#allocation2 + $0x8] sm:$0xff] }
 0x20d   : > { %2926 = vmatpush.bf16.msra.mxu1 %v4713_v48  ;;  %v2355_v16 = vld [vmem:[#allocation2 + $0x20] sm:$0xff]  ;;  %v4760_v45 = vld [vmem:[#allocation9 + $0x1c8] sm:$0xff]  ;;  %v2356_v46 = vld [vmem:[#allocation2 + $0x28] sm:$0xff]  ;;  %v2380_v48 = vadd.f32 %v2364_v31, %v2354_v43 }
 0x20e   : > { %2939 = vmatpush.bf16.msra.mxu2 %v4721_v49  ;;  %v2357_v47 = vld [vmem:[#allocation2 + $0x38] sm:$0xff]  ;;  %v2381_v49 = vadd.f32 %v2365_v42, %v2355_v16  ;;  %v4751_v55 = vld [vmem:[#allocation9 + $0x180] sm:$0xff] }
 0x20f   : > { %2952 = vmatpush.bf16.msra.mxu3 %v4729_v50  ;;  %v4735_v50 = vld [vmem:[#allocation9 + $0x100] sm:$0xff] }
 0x210   : > { %2914 = vmatpush.bf16.msra.mxu0 %v4704_v52  ;;  %v4743_v52 = vld [vmem:[#allocation9 + $0x140] sm:$0xff]  ;;  %v2389_v58 = vpack.c.bf16 %v2381_v49, %v2381_v49 }
 0x211   : > { %2927 = vmatpush.bf16.msra.mxu1 %v4712_v53  ;;  %v2382_v53 = vadd.f32 %v2366_v44, %v2356_v46  ;;  %v4759_v56 = vld [vmem:[#allocation9 + $0x1c0] sm:$0xff] }
 0x212   : > { %2940 = vmatpush.bf16.msra.mxu2 %v4720_v54  ;;  %v2383_v54 = vadd.f32 %v2367_v17, %v2357_v47  ;;  %v4870_v2 = vld [vmem:[#allocation11] ss:$0 sm:$0xff] }
 0x213   : > { %2953 = vmatpush.bf16.msra.mxu3 %v4728_v57  ;;  %v2388_v57 = vpack.c.bf16 %v2380_v48, %v2380_v48  ;;  %v2390_v51 = vpack.c.bf16 %v2382_v53, %v2382_v53 }
 0x214   : > { %2915 = vmatpush.bf16.msra.mxu0 %v4703_v0  ;;  %v2391_v59 = vpack.c.bf16 %v2383_v54, %v2383_v54 }
 0x215   : > { %2928 = vmatpush.bf16.msra.mxu1 %v4711_v1 }
 0x216   : > { %2941 = vmatpush.bf16.msra.mxu2 %v4719_v4 }
 0x217   : > { %2954 = vmatpush.bf16.msra.mxu3 %v4727_v5  ;;  %2916 = vmatmul.bf16.vlgmr.msra.gmra.mxu0 %v2384_v14 }
 0x218   : > { %2960 = vmatpush.bf16.msrb.mxu0 %v4742_v8  ;;  %2929 = vmatmul.bf16.vlgmr.msra.gmra.mxu1 %v2385_v15 }
 0x219   : > { %2973 = vmatpush.bf16.msrb.mxu1 %v4750_v9  ;;  %2942 = vmatmul.bf16.vlgmr.msra.gmra.mxu2 %v2386_v12 }
 0x21a   : > { %2986 = vmatpush.bf16.msrb.mxu2 %v4758_v10  ;;  %2955 = vmatmul.bf16.vlgmr.msra.gmra.mxu3 %v2387_v13 }
 0x21b   : > { %2999 = vmatpush.bf16.msrb.mxu3 %v4766_v11 }
 0x21c   : > { %2961 = vmatpush.bf16.msrb.mxu0 %v4741_v18 }
 0x21d   : > { %2974 = vmatpush.bf16.msrb.mxu1 %v4749_v19 }
 0x21e   : > { %2987 = vmatpush.bf16.msrb.mxu2 %v4757_v20 }
 0x21f   : > { %3000 = vmatpush.bf16.msrb.mxu3 %v4765_v21 }
 0x220   : > { %2962 = vmatpush.bf16.msrb.mxu0 %v4740_v22 }
 0x221   : > { %2975 = vmatpush.bf16.msrb.mxu1 %v4748_v23 }
 0x222   : > { %2988 = vmatpush.bf16.msrb.mxu2 %v4756_v24 }
 0x223   : > { %3001 = vmatpush.bf16.msrb.mxu3 %v4764_v25 }
 0x224   : > { %2963 = vmatpush.bf16.msrb.mxu0 %v4739_v26 }
 0x225   : > { %2976 = vmatpush.bf16.msrb.mxu1 %v4747_v27 }
 0x226   : > { %2989 = vmatpush.bf16.msrb.mxu2 %v4755_v28 }
 0x227   : > { %3002 = vmatpush.bf16.msrb.mxu3 %v4763_v29 }
 0x228   : > { %2964 = vmatpush.bf16.msrb.mxu0 %v4738_v30 }
 0x229   : > { %2977 = vmatpush.bf16.msrb.mxu1 %v4746_v33 }
 0x22a   : > { %2990 = vmatpush.bf16.msrb.mxu2 %v4754_v34 }
 0x22b   : > { %3003 = vmatpush.bf16.msrb.mxu3 %v4762_v35 }
 0x22c   : > { %2965 = vmatpush.bf16.msrb.mxu0 %v4737_v36 }
 0x22d   : > { %2978 = vmatpush.bf16.msrb.mxu1 %v4745_v37 }
 0x22e   : > { %2991 = vmatpush.bf16.msrb.mxu2 %v4753_v38 }
 0x22f   : > { %3004 = vmatpush.bf16.msrb.mxu3 %v4761_v39 }
 0x230   : > { %2966 = vmatpush.bf16.msrb.mxu0 %v4736_v40 }
 0x231   : > { %2979 = vmatpush.bf16.msrb.mxu1 %v4744_v41 }
 0x232   : > { %2992 = vmatpush.bf16.msrb.mxu2 %v4752_v32 }
 0x233   : > { %3005 = vmatpush.bf16.msrb.mxu3 %v4760_v45 }
 0x234   : > { %2967 = vmatpush.bf16.msrb.mxu0 %v4735_v50 }
 0x235   : > { %2980 = vmatpush.bf16.msrb.mxu1 %v4743_v52 }
 0x236   : > { %2993 = vmatpush.bf16.msrb.mxu2 %v4751_v55 }
 0x237   : > { %3006 = vmatpush.bf16.msrb.mxu3 %v4759_v56  ;;  %2968 = vmatmul.bf16.vlgmr.msrb.gmra.mxu0 %v2388_v57 }
 0x238   : > { %2981 = vmatmul.bf16.vlgmr.msrb.gmra.mxu1 %v2389_v58 }
 0x239   : > { %2994 = vmatmul.bf16.vlgmr.msrb.gmra.mxu2 %v2390_v51 }
 0x23a   : > { %3007 = vmatmul.bf16.vlgmr.msrb.gmra.mxu3 %v2391_v59 }
 0x294   : > { %v2917_v60 = vpop.f32.mrf.mxu0 }
 0x295   : > { %v2930_v61 = vpop.f32.mrf.mxu1  ;;  %v2918_v5 = vadd.f32 %v4870_v2, %v2917_v60 }
 0x297   : > { %v2931_v6 = vadd.f32 %v2930_v61, %v2918_v5 }
 0x29c   : > { %v2943_v62 = vpop.f32.mrf.mxu2  ;;  %v2919_v0 = vpop.f32.mrf.mxu0 }
 0x29d   : > { %v2956_v63 = vpop.f32.mrf.mxu3  ;;  %v2932_v1 = vpop.f32.mrf.mxu1  ;;  %v2944_v7 = vadd.f32 %v2943_v62, %v2931_v6 }
 0x29f   : > { %v2957_v8 = vadd.f32 %v2956_v63, %v2944_v7 }
 0x2a4   : > { %v2945_v3 = vpop.f32.mrf.mxu2 }
 0x2a5   : > { %v2958_v4 = vpop.f32.mrf.mxu3 }
 0x2b4   : > { %v2969_v9 = vpop.f32.mrf.mxu0 }
 0x2b5   : > { %v2982_v10 = vpop.f32.mrf.mxu1  ;;  %v2970_v11 = vadd.f32 %v2969_v9, %v2957_v8 }
 0x2b7   : > { %v2983_v12 = vadd.f32 %v2982_v10, %v2970_v11 }
 0x2bc   : > { %v2995_v13 = vpop.f32.mrf.mxu2  ;;  %v2971_v18 = vpop.f32.mrf.mxu0 }
 0x2bd   : > { %v3008_v14 = vpop.f32.mrf.mxu3  ;;  %v2996_v15 = vadd.f32 %v2995_v13, %v2983_v12  ;;  %v2984_v19 = vpop.f32.mrf.mxu1 }
 0x2bf   : > { %v3009_v20 = vadd.f32 %v3008_v14, %v2996_v15 }
 0x2c1   : > { %3012 = vst [vmem:[#allocation12] sm:$0xff] %v3009_v20 }
 0x2c4   : > { %v2997_v21 = vpop.f32.mrf.mxu2 }
 0x2c5   : > { %v3010_v22 = vpop.f32.mrf.mxu3 }
 0x2c6 PF: > { %p4811_p3 = scmp.eq.s32.totalorder %s5185_s24, 1  ;;  %s3023_s29 = sshll.u32 %s5874_s5, 4  ;;  %s3024_s29 = int_to_ptr.hbm [resolvable:$true] %s3023_s29 }
 0x2c7   : > { %s5125_s26 = smov [#allocation12]  }
 0x2c8   : > { %s3021_s27 = sshll.u32 %s5125_s26, 4  ;;  %s3022_s27 = int_to_ptr.vmem [resolvable:$true] %s3021_s27 }
 0x2c9   : > { %4784 = dma.vmem_to_hbm [thread:$0]  (%p4811_p3), %s3022_s27, 128, %s3024_s29, [#allocation5]  }
 0x2ca   : > { %5090 = dma.done.wait (%p4811_p3), [#allocation5], 128  }
 0x2cb   : > { %5092 = vsyncadd (%p4811_p3), [#allocation5], 4294967168 }
 0x2cc PF: > { %s23_s23 = sadd.s32 1, %s5115_s23   ;;  %s5883_s18 = smov %s5099_s19 }
 0x2cd   : > { %p20_p4 = scmp.ge.s32.totalorder %s23_s23, 4   ;;  %s5884_s19 = smov %s5103_s20 }
 0x2ce   : > { %s5885_s20 = smov %s5237_s11  ;;  %s5886_s21 = smov %s5111_s22 }
 0x2cf   : > { %s5887_s22 = smov %s5889_s28  ;;  %22 = sbr.rel (!%p20_p4) target bundleno = 11 (0xb), region = 111 }
 0x2d4   :  { %3037 = vsyncpa [#allocation4], 1 }
 0x2d5   :  { %3039 = vsyncpa [#allocation4 + $0x1], 1 }
 0x2d6   :  { %3040 = vsyncpa [#allocation7], 1 }
 0x2d7   :  { %3042 = vsyncpa [#allocation7 + $0x1], 1 }
 0x2d8   :  { %3043 = vsyncpa [#allocation10], 1 }
 0x2d9   :  { %3044 = vsyncpa [#allocation5], 1 }
 0x2da   :  { %3046 = vsyncpa [#allocation5 + $0x1], 1 }

</bundles_post_ra>
